<compile_context>
chip_gen: v7x
topology: tpu7x:2x2x1
jax: 0.10.0
libtpu: 0.0.40
codegen_flags: <defaults>
</compile_context>

<pallas_src>
import functools

import numpy as np
import jax
import jax.numpy as jnp
from jax.experimental import pallas as pl
from jax.experimental.pallas import tpu as pltpu


_CLAMP_MIN = 1e-06
_CLAMP_MAX = 1e06

# Per-block f32 working-set target.  ~2.5 us of HBM time on v7x, ~6 us on
# v6e, vs ~0.35 us per-step grid overhead.  Chosen so the conservative VMEM
# accounting below (double-buffered input + f32 temporaries) stays well under
# the 64 MiB physical VMEM of v7x for every input dtype.
_TILE_F32_BUDGET = 8 << 20
# Inputs smaller than this go through plain XLA (launch cost dominates).
_MIN_PALLAS_BYTES = 16 * 1024


def _logvar_kernel(x_ref, o_ref, *, seg_len, num_seg):
    """One row-tile: per-(row, segment) unbiased log-variance.

    x_ref: (tr, W) block, W = num_seg * seg_len (segments packed along lanes).
    o_ref: (tr, num_seg) log-variance per segment.
    """
    x = x_ref[...].astype(jnp.float32)
    w = seg_len * num_seg
    inv_n = jnp.float32(1.0 / seg_len)
    inv_nm1 = jnp.float32(1.0 / (seg_len - 1))  # seg_len >= 2 guaranteed by wrapper

    if num_seg > 1:
        # 0/1 segment selector: sel[i, j] = 1 iff lane i belongs to segment j.
        lane = jax.lax.broadcasted_iota(jnp.int32, (w, num_seg), 0)
        seg = jax.lax.broadcasted_iota(jnp.int32, (w, num_seg), 1)
        sel = (lane // seg_len == seg).astype(jnp.float32)          # (W, g)
        lane_t = jax.lax.broadcasted_iota(jnp.int32, (num_seg, w), 1)
        seg_t = jax.lax.broadcasted_iota(jnp.int32, (num_seg, w), 0)
        sel_t = (lane_t // seg_len == seg_t).astype(jnp.float32)    # (g, W)

        # Segmented sums / mean broadcast / segmented sum-of-squares all ride
        # the MXU (idle otherwise), keeping XLU/VPU off the critical path.
        s = jnp.dot(x, sel, preferred_element_type=jnp.float32)      # (tr, g)
        mean = s * inv_n
        mean_b = jnp.dot(mean, sel_t, preferred_element_type=jnp.float32)  # (tr, W)
        d = x - mean_b
        ss = jnp.dot(d * d, sel, preferred_element_type=jnp.float32)  # (tr, g)
    else:
        ones = jnp.ones((w, 1), jnp.float32)
        s = jnp.dot(x, ones, preferred_element_type=jnp.float32)      # (tr, 1)
        mean = s * inv_n
        d = x - mean                                                   # lane broadcast
        ss = jnp.dot(d * d, ones, preferred_element_type=jnp.float32)  # (tr, 1)

    var = ss * inv_nm1
    var = jnp.clip(var, _CLAMP_MIN, _CLAMP_MAX)
    o_ref[...] = jnp.log(var).astype(o_ref.dtype)


def _num_tensorcores():
    """Best-effort TensorCore count (2 on v7x-class chips, else 1)."""
    try:
        info = pltpu.get_tpu_info()
    except Exception:
        return 1
    for name in ("num_cores", "core_count", "num_tensorcores",
                 "tensorcores_per_chip", "num_tensor_cores"):
        v = getattr(info, name, None)
        if isinstance(v, int) and 1 <= v <= 16:
            return v
    return 1


def _plan_tiling(packed_rows, lane_width, num_cores):
    """Pick (tile_rows, num_blocks, padded_lane_width) from the VMEM budget."""
    lanes_padded = max(128, ((lane_width + 127) // 128) * 128)
    row_bytes_f32 = lanes_padded * 4
    tr = max(8, (_TILE_F32_BUDGET // row_bytes_f32) // 8 * 8)   # no artificial row cap
    num_blocks = -(-packed_rows // tr)
    if num_cores > 1:
        # Give each TensorCore >= 2 grid steps (prefetch overlap on both cores).
        target = 2 * num_cores
        num_blocks = max(num_blocks, min(target, max(1, packed_rows // 8)))
    # Single-TC chips: never force a split (the grid is a serial loop there).
    # Rebalance the tile across blocks (minimizes tail padding), multiple of 8.
    tr = ((-(-packed_rows // num_blocks) + 7) // 8) * 8
    num_blocks = -(-packed_rows // tr)
    return tr, num_blocks, lanes_padded


def _logvar_jnp(x, dim):
    var = jnp.var(x.astype(jnp.float32), axis=dim, keepdims=True, ddof=1)
    return jnp.log(jnp.clip(var, _CLAMP_MIN, _CLAMP_MAX)).astype(x.dtype)


def log_var_layer(x, dim, *, min_pallas_bytes=_MIN_PALLAS_BYTES):
    """Pallas implementation of LogVarLayer.forward(x)."""
    ndim = x.ndim
    dim = dim % ndim
    T = x.shape[dim]

    # T == 1: unbiased variance is 0/0 -> NaN (same as torch); trivial path.
    if T <= 1:
        return _logvar_jnp(x, dim)

    # Tiny inputs: a fused XLA reduction beats a kernel launch.
    if x.size * x.dtype.itemsize < min_pallas_bytes:
        return _logvar_jnp(x, dim)

    # Fast path: reduction axis already last -> flattening is a free reshape.
    # TODO(synk): for dim == ndim-2, reduce over the sublane axis in-kernel
    # (3-D block) instead of paying this full-tensor HBM transpose.
    if dim != ndim - 1:
        x_moved = jnp.moveaxis(x, dim, -1)
    else:
        x_moved = x

    lead_shape = x_moved.shape[:-1]
    R = int(np.prod(lead_shape)) if lead_shape else 1

    # Pack g original rows per lane-row when T < 128: full-lane, contiguous
    # DMA and 8x more useful HBM bytes per VMEM byte for FBCNet-sized T.
    g = max(1, 128 // T)
    W = g * T
    num_cores = _num_tensorcores()
    lanes_padded = max(128, ((W + 127) // 128) * 128)

    # Reduction axis too long for even a minimal 8-row tile -> fall back.
    # TODO(synk): tile the reduction axis in-kernel for very long T.
    if 8 * lanes_padded * 4 > 2 * _TILE_F32_BUDGET:
        out = _logvar_jnp(x_moved, -1)
        return jnp.moveaxis(out, -1, dim) if dim != ndim - 1 else out

    P = -(-R // g)                                     # packed rows
    tr, num_blocks, lanes_padded = _plan_tiling(P, W, num_cores)
    P_pad = num_blocks * tr
    R_total = P_pad * g

    x2 = x_moved.reshape(R, T)
    if R_total != R:
        # Zero rows -> var 0 -> clamp -> log(1e-6); sliced off below.
        x2 = jnp.pad(x2, ((0, R_total - R), (0, 0)))
    x2 = x2.reshape(P_pad, W)                          # contiguous repack, free

    # VMEM: double-buffered input tile + f32 temporaries (cast / deviations /
    # squared deviations) + slack.  Capped under v7x's 64 MiB physical VMEM.
    tile_in = tr * lanes_padded * x2.dtype.itemsize
    tile_f32 = tr * lanes_padded * 4
    vmem_limit = min(2 * tile_in + 3 * tile_f32 + (8 << 20), 56 << 20)

    kernel = functools.partial(_logvar_kernel, seg_len=T, num_seg=g)
    out = pl.pallas_call(
        kernel,
        out_shape=jax.ShapeDtypeStruct((P_pad, g), x.dtype),
        grid_spec=pl.GridSpec(
            grid=(num_blocks,),
            in_specs=[pl.BlockSpec((tr, W), lambda i: (i, 0))],
            out_specs=pl.BlockSpec((tr, g), lambda i: (i, 0)),
        ),
        compiler_params=pltpu.CompilerParams(
            dimension_semantics=("parallel",),
            vmem_limit_bytes=int(vmem_limit),
        ),
    )(x2)

    # (P_pad, g) rows/segments flatten back to original row order.
    out = out.reshape(R_total)[:R].reshape(lead_shape + (1,))
    if dim != ndim - 1:
        out = jnp.moveaxis(out, -1, dim)
    return out


def _reference(x, dim):
    # Pure-JAX reference (unbiased variance, clamp, log) for verification.
    var = jnp.var(x.astype(jnp.float32), axis=dim, keepdims=True, ddof=1)
    return jnp.log(jnp.clip(var, _CLAMP_MIN, _CLAMP_MAX)).astype(x.dtype)


def _check(y, x, dim):
    np.testing.assert_allclose(
        np.asarray(y), np.asarray(_reference(x, dim)), rtol=5e-5, atol=2e-5
    )


if __name__ == "__main__":
    key = jax.random.PRNGKey(0)
    ks = jax.random.split(key, 4)

    # 1) FBCNet-style temporal variance pooling (batch, bands*m, stride, T), dim=3.
    #    The +3.0 DC offset exercises the two-pass numerical-stability path.
    x1 = jax.random.normal(ks[0], (2, 36, 4, 250), dtype=jnp.float32) + 3.0
    y1 = jax.block_until_ready(log_var_layer(x1, 3))
    assert y1.shape == (2, 36, 4, 1), y1.shape
    _check(y1, x1, 3)

    # 2) Small reduce length (T=16 -> g=8 lane packing).
    x2 = jax.random.normal(ks[1], (4, 16, 32, 16), dtype=jnp.float32) * 0.5 + 1.0
    y2 = jax.block_until_ready(log_var_layer(x2, 3))
    assert y2.shape == (4, 16, 32, 1), y2.shape
    _check(y2, x2, 3)

    # 3) Odd sizes: non-128-multiple packed width (T=48 -> W=96) + row padding.
    x3 = jax.random.normal(ks[2], (3, 5, 7, 48), dtype=jnp.float32)
    y3 = jax.block_until_ready(log_var_layer(x3, 3))
    assert y3.shape == (3, 5, 7, 1), y3.shape
    _check(y3, x3, 3)

    # 4) Non-last reduction dim -> moveaxis fallback path (T=4 -> g=32 packing).
    y4 = jax.block_until_ready(log_var_layer(x1, 2))
    assert y4.shape == (2, 36, 1, 250), y4.shape
    _check(y4, x1, 2)

    # 5) Tiny input -> jnp fast path (8 KiB; kernel launch would dominate).
    x5 = jax.random.normal(ks[3], (2, 4, 16, 16), dtype=jnp.float32)
    y5 = jax.block_until_ready(log_var_layer(x5, 3))
    assert y5.shape == (2, 4, 16, 1), y5.shape
    _check(y5, x5, 3)

    print("KERNEL_OK")
</pallas_src>

<mosaic_0001>
module attributes {stable_mosaic.version = 11 : i64} {
  func.func @_logvar_kernel(%arg0: i32, %arg1: memref<288x250xf32, #tpu.memory_space<vmem>>, %arg2: memref<288x1xf32, #tpu.memory_space<vmem>>) attributes {dimension_semantics = [#tpu.dimension_semantics<parallel>], iteration_bounds = array<i64: 1>, scalar_prefetch = 0 : i64, scratch_operands = 0 : i64, tpu.core_type = #tpu.core_type<tc>, window_params = [{transform_indices = @transform_0, window_bounds = array<i64: 288, 250>}, {transform_indices = @transform_1, window_bounds = array<i64: 288, 1>}]} {
    %c0 = arith.constant 0 : index
    %c0_0 = arith.constant 0 : index
    %0 = vector.load %arg1[%c0, %c0_0] : memref<288x250xf32, #tpu.memory_space<vmem>>, vector<288x250xf32>
    %cst = arith.constant 1.000000e+00 : f32
    %1 = vector.broadcast %cst : f32 to vector<250x1xf32>
    %cst_1 = arith.constant dense<0.000000e+00> : vector<288x1xf32>
    %2 = tpu.matmul %0, %1, %cst_1 {dimension_numbers = #tpu.dot_dimension_numbers<[1], [0], [0], [1], [0, 0, 1, 1], [], []>} : vector<288x250xf32>, vector<250x1xf32>, vector<288x1xf32> -> vector<288x1xf32>
    %cst_2 = arith.constant 4.000000e-03 : f32
    %3 = vector.broadcast %cst_2 : f32 to vector<288x1xf32>
    %4 = arith.mulf %2, %3 : vector<288x1xf32>
    %5 = vector.broadcast %4 : vector<288x1xf32> to vector<288x250xf32>
    %6 = arith.subf %0, %5 : vector<288x250xf32>
    %7 = arith.mulf %6, %6 : vector<288x250xf32>
    %cst_3 = arith.constant dense<0.000000e+00> : vector<288x1xf32>
    %8 = tpu.matmul %7, %1, %cst_3 {dimension_numbers = #tpu.dot_dimension_numbers<[1], [0], [0], [1], [0, 0, 1, 1], [], []>} : vector<288x250xf32>, vector<250x1xf32>, vector<288x1xf32> -> vector<288x1xf32>
    %cst_4 = arith.constant 0.00401606411 : f32
    %9 = vector.broadcast %cst_4 : f32 to vector<288x1xf32>
    %10 = arith.mulf %8, %9 : vector<288x1xf32>
    %cst_5 = arith.constant 9.99999997E-7 : f32
    %cst_6 = arith.constant 1.000000e+06 : f32
    %11 = vector.broadcast %cst_5 : f32 to vector<288x1xf32>
    %12 = arith.maximumf %11, %10 : vector<288x1xf32>
    %13 = vector.broadcast %cst_6 : f32 to vector<288x1xf32>
    %14 = arith.minimumf %13, %12 : vector<288x1xf32>
    %15 = math.log %14 : vector<288x1xf32>
    %c0_7 = arith.constant 0 : index
    %c0_8 = arith.constant 0 : index
    %16 = vector.load %arg2[%c0_7, %c0_8] : memref<288x1xf32, #tpu.memory_space<vmem>>, vector<288x1xf32>
    tpu.vector_store %arg2[%c0_7, %c0_8], %15 {strides = array<i32>} : memref<288x1xf32, #tpu.memory_space<vmem>>, vector<288x1xf32>,
    return
  }
  func.func @transform_0(%arg0: i32) -> (i32, i32) {
    %c0_i32 = arith.constant 0 : i32
    %c0_i32_0 = arith.constant 0 : i32
    return %arg0, %c0_i32 : i32, i32
  }
  func.func @transform_1(%arg0: i32) -> (i32, i32) {
    %c0_i32 = arith.constant 0 : i32
    %c0_i32_0 = arith.constant 0 : i32
    return %arg0, %c0_i32 : i32, i32
  }
}

</mosaic_0001>

<bundles_post_ra>
// kernel: tpu_custom_call.1
= control target key start
LH: loop header
LB: loop body
LE: loop exit
PB: predicated region body
PF: predicated region fallthrough
CT: control target
= control target key end

     0   :  { %6 = vsyncpa [#allocation3], 0  ;;  %s1632_s6 = smov [#allocation2]   ;;  %s2229_s0 = inlined_call_operand.hbm [shape: f32[288,250], index: 0, kind: input, shape index: {}]   ;;  %s2230_s1 = inlined_call_operand.vmem [shape: f32[288,1], index: 1, kind: output, shape index: {}]  }
   0x1   :  { %s12_s7 = sshll.u32 %s1632_s6, 4  ;;  %s1608_s10 = scalar_lea.hbm %s2229_s0, 9216  ;;  %s13_s7 = int_to_ptr.vmem [resolvable:$true] %s12_s7 }
   0x2   :  { %p1609_p0 = scmp.ne.s32.totalorder %s2229_s0, %s1608_s10  ;;  %p1612_p1 = scmp.lt.u32.totalorder %s1608_s10, %s2229_s0 }
   0x4   :  { %p1614_p2 = pnand %p1612_p1, %p1609_p0 }
   0x6   :  { %1617 = shalt.err (!%p1614_p2)
}
   0x7   :  { %s1618_s15 = scalar_lea.vmem %s13_s7, 9216  ;;  %p1623_p4 = scmp.lt.s32.totalorder %s13_s7, %s13_s7 }
   0x8   :  { %p1619_p3 = scmp.ne.s32.totalorder %s13_s7, %s1618_s15  ;;  %p1624_p5 = scmp.lt.s32.totalorder %s1618_s15, %s1618_s15 }
   0xa   :  { %p1625_p6 = por %p1624_p5, %p1623_p4 }
   0xc   :  { %p1626_p7 = pnand %p1625_p6, %p1619_p3 }
   0xe   :  { %1629 = shalt.err (!%p1626_p7)
}
   0xf   :  { %s1633_s16 = smov 256   ;;  %s1634_s17 = smov 16  }
  0x10   :  { %18 = dma.hbm_to_vmem [thread:$0]  %s2229_s0, 9216, %s13_s7, [#allocation3], %s1633_s16, %s1633_s16, %s1634_s17  }
  0x11   :  { %1630 = dma.done.wait [#allocation3], 9216  }
  0x12   :  { %1631 = vsyncadd [#allocation3], 4294958080  ;;  %v1635_v0 = vmov 0.0|0.0   ;;  %v1636_v1 = vmov 1.0|1.0   ;;  %vm94_vm0 = vcmask 998400  }
  0x13   :  { %1461 = vmatprep.subr.bf16.mxu0 %v1635_v0  ;;  %1494 = vmatprep.subr.bf16.mxu1 %v1635_v0  ;;  %v1670_v2 = vld [vmem:[#allocation2 + $0x8] sm:$0xff]  ;;  %vm203_vm1 = vcmask 1041408   ;;  %vm1637_vm2 = vmmov 1   ;;  %v1728_v3 = vld [vmem:[#allocation2] sm:$0xff]  ;;  %v1731_v4 = vld [vmem:[#allocation2 + $0x18] sm:$0xff]  ;;  %v1638_v48 = vmov 0  }
  0x14   :  { %1462 = vmatpush1.bf16.msra.mxu0 %v1636_v1  ;;  %1495 = vmatpush1.bf16.msra.mxu1 %v1636_v1  ;;  %vm1492_vm3 = vmpackc.low %vm203_vm1, %vm1637_vm2  ;;  %v1736_v5 = vld [vmem:[#allocation2 + $0x10] sm:$0xff]  ;;  %v1738_v6 = vld [vmem:[#allocation2 + $0x28] sm:$0xff]  ;;  %vm1345_vm4 = vcmask 7168  }
  0x15   :  { %1463 = vmatprep.subr.bf16.mxu0 %v1635_v0  ;;  %1496 = vmatprep.subr.bf16.mxu1 %v1635_v0  ;;  %v1743_v7 = vld [vmem:[#allocation2 + $0x20] sm:$0xff]  ;;  %v1745_v8 = vld [vmem:[#allocation2 + $0x38] sm:$0xff]  ;;  %v1750_v9 = vld [vmem:[#allocation2 + $0x30] sm:$0xff] }
  0x16   :  { %1388 = vmatprep.mubr.msk.f32.mxu0 %vm94_vm0, %v1670_v2  ;;  %v1752_v10 = vld [vmem:[#allocation2 + $0x48] sm:$0xff]  ;;  %v1757_v11 = vld [vmem:[#allocation2 + $0x40] sm:$0xff]  ;;  %v1759_v12 = vld [vmem:[#allocation2 + $0x58] sm:$0xff]  ;;  %1534 = vset.pattern.permute.xlu0 %v1638_v48 }
  0x17   :  { %v1764_v13 = vld [vmem:[#allocation2 + $0x50] sm:$0xff]  ;;  %v1766_v14 = vld [vmem:[#allocation2 + $0x68] sm:$0xff]  ;;  %v1771_v15 = vld [vmem:[#allocation2 + $0x60] sm:$0xff]  ;;  %1535 = vset.pattern.permute.xlu1 %v1638_v48 }
  0x18   :  { %1464 = vmatpush1.bf16.msra.mxu0 %v1636_v1  ;;  %1497 = vmatpush1.bf16.msra.mxu1 %v1636_v1  ;;  %v1773_v16 = vld [vmem:[#allocation2 + $0x78] sm:$0xff]  ;;  %v1778_v17 = vld [vmem:[#allocation2 + $0x70] sm:$0xff]  ;;  %v1780_v18 = vld [vmem:[#allocation2 + $0x88] sm:$0xff] }
  0x19   :  { %1465 = vmatprep.subr.bf16.mxu0 %v1635_v0  ;;  %1498 = vmatprep.subr.bf16.mxu1 %v1635_v0  ;;  %v1785_v19 = vld [vmem:[#allocation2 + $0x80] sm:$0xff]  ;;  %v1787_v20 = vld [vmem:[#allocation2 + $0x98] sm:$0xff]  ;;  %v1792_v21 = vld [vmem:[#allocation2 + $0x90] sm:$0xff] }
  0x1a   :  { %v1794_v22 = vld [vmem:[#allocation2 + $0xa8] sm:$0xff]  ;;  %v1799_v23 = vld [vmem:[#allocation2 + $0xa0] sm:$0xff]  ;;  %v1801_v24 = vld [vmem:[#allocation2 + $0xb8] sm:$0xff] }
  0x1b   :  { %v1806_v25 = vld [vmem:[#allocation2 + $0xb0] sm:$0xff]  ;;  %v1808_v26 = vld [vmem:[#allocation2 + $0xc8] sm:$0xff]  ;;  %v1813_v27 = vld [vmem:[#allocation2 + $0xc0] sm:$0xff] }
  0x1c   :  { %1466 = vmatpush1.bf16.msra.mxu0 %v1636_v1  ;;  %1499 = vmatpush1.bf16.msra.mxu1 %v1636_v1  ;;  %v1815_v28 = vld [vmem:[#allocation2 + $0xd8] sm:$0xff]  ;;  %v1820_v29 = vld [vmem:[#allocation2 + $0xd0] sm:$0xff]  ;;  %v1822_v30 = vld [vmem:[#allocation2 + $0xe8] sm:$0xff] }
  0x1d   :  { %1467 = vmatprep.subr.bf16.mxu0 %v1635_v0  ;;  %1500 = vmatprep.subr.bf16.mxu1 %v1635_v0  ;;  %v1827_v31 = vld [vmem:[#allocation2 + $0xe0] sm:$0xff]  ;;  %v1829_v32 = vld [vmem:[#allocation2 + $0xf8] sm:$0xff]  ;;  %v1834_v33 = vld [vmem:[#allocation2 + $0xf0] sm:$0xff] }
  0x1e   :  { %v1836_v34 = vld [vmem:[#allocation2 + $0x108] sm:$0xff]  ;;  %v1841_v35 = vld [vmem:[#allocation2 + $0x100] sm:$0xff]  ;;  %v1843_v36 = vld [vmem:[#allocation2 + $0x118] sm:$0xff] }
  0x1f   :  { %v1848_v37 = vld [vmem:[#allocation2 + $0x110] sm:$0xff]  ;;  %v1850_v38 = vld [vmem:[#allocation2 + $0x128] sm:$0xff]  ;;  %v1855_v39 = vld [vmem:[#allocation2 + $0x120] sm:$0xff] }
  0x20   :  { %1468 = vmatpush1.bf16.msra.mxu0 %v1636_v1  ;;  %1501 = vmatpush1.bf16.msra.mxu1 %v1636_v1  ;;  %v1857_v40 = vld [vmem:[#allocation2 + $0x138] sm:$0xff]  ;;  %v1862_v41 = vld [vmem:[#allocation2 + $0x130] sm:$0xff]  ;;  %v1864_v42 = vld [vmem:[#allocation2 + $0x148] sm:$0xff] }
  0x21   :  { %1469 = vmatprep.subr.bf16.mxu0 %v1635_v0  ;;  %1502 = vmatprep.subr.bf16.mxu1 %v1635_v0  ;;  %v1869_v43 = vld [vmem:[#allocation2 + $0x140] sm:$0xff]  ;;  %v1871_v44 = vld [vmem:[#allocation2 + $0x158] sm:$0xff]  ;;  %v1876_v45 = vld [vmem:[#allocation2 + $0x150] sm:$0xff] }
  0x22   :  { %v1878_v46 = vld [vmem:[#allocation2 + $0x168] sm:$0xff]  ;;  %v1883_v47 = vld [vmem:[#allocation2 + $0x160] sm:$0xff]  ;;  %v1885_v49 = vld [vmem:[#allocation2 + $0x178] sm:$0xff] }
  0x23   :  { %v1890_v50 = vld [vmem:[#allocation2 + $0x170] sm:$0xff]  ;;  %v1892_v51 = vld [vmem:[#allocation2 + $0x188] sm:$0xff]  ;;  %v1897_v52 = vld [vmem:[#allocation2 + $0x180] sm:$0xff] }
  0x24   :  { %1470 = vmatpush1.bf16.msra.mxu0 %v1636_v1  ;;  %1503 = vmatpush1.bf16.msra.mxu1 %v1636_v1  ;;  %2255 = vst [vmem:[#allocation5_spill] sm:$0xff] %v1892_v51  ;;  %2256 = vst [vmem:[#allocation6_spill] sm:$0xff] %v1897_v52  ;;  %v1899_v53 = vld [vmem:[#allocation2 + $0x198] sm:$0xff]  ;;  %v1904_v54 = vld [vmem:[#allocation2 + $0x190] sm:$0xff] }
  0x25   :  { %1471 = vmatprep.subr.bf16.mxu0 %v1635_v0  ;;  %1504 = vmatprep.subr.bf16.mxu1 %v1635_v0  ;;  %2257 = vst [vmem:[#allocation7_spill] sm:$0xff] %v1899_v53  ;;  %2258 = vst [vmem:[#allocation8_spill] sm:$0xff] %v1904_v54  ;;  %v1906_v55 = vld [vmem:[#allocation2 + $0x1a8] sm:$0xff]  ;;  %v1911_v56 = vld [vmem:[#allocation2 + $0x1a0] sm:$0xff] }
  0x26   :  { %2259 = vst [vmem:[#allocation9_spill] sm:$0xff] %v1906_v55  ;;  %2260 = vst [vmem:[#allocation10_spill] sm:$0xff] %v1911_v56  ;;  %v1913_v57 = vld [vmem:[#allocation2 + $0x1b8] sm:$0xff]  ;;  %v1918_v58 = vld [vmem:[#allocation2 + $0x1b0] sm:$0xff] }
  0x27   :  { %2261 = vst [vmem:[#allocation11_spill] sm:$0xff] %v1913_v57  ;;  %2262 = vst [vmem:[#allocation12_spill] sm:$0xff] %v1918_v58  ;;  %v1920_v59 = vld [vmem:[#allocation2 + $0x1c8] sm:$0xff]  ;;  %v1925_v60 = vld [vmem:[#allocation2 + $0x1c0] sm:$0xff] }
  0x28   :  { %1472 = vmatpush1.bf16.msra.mxu0 %v1636_v1  ;;  %1505 = vmatpush1.bf16.msra.mxu1 %v1636_v1  ;;  %2263 = vst [vmem:[#allocation13_spill] sm:$0xff] %v1920_v59  ;;  %2264 = vst [vmem:[#allocation14_spill] sm:$0xff] %v1925_v60  ;;  %v1927_v61 = vld [vmem:[#allocation2 + $0x1d8] sm:$0xff]  ;;  %v1932_v62 = vld [vmem:[#allocation2 + $0x1d0] sm:$0xff] }
  0x29   :  { %1473 = vmatprep.subr.bf16.mxu0 %v1635_v0  ;;  %1506 = vmatprep.subr.bf16.mxu1 %v1635_v0  ;;  %2265 = vst [vmem:[#allocation15_spill] sm:$0xff] %v1927_v61  ;;  %2266 = vst [vmem:[#allocation16_spill] sm:$0xff] %v1932_v62  ;;  %v1934_v63 = vld [vmem:[#allocation2 + $0x1e8] sm:$0xff]  ;;  %v1946_v48 = vld [vmem:[#allocation2 + $0x1f0] sm:$0xff] }
  0x2a   :  { %2267 = vst [vmem:[#allocation17_spill] sm:$0xff] %v1934_v63  ;;  %2270 = vst [vmem:[#allocation20_spill] sm:$0xff] %v1946_v48 }
  0x2c   :  { %1474 = vmatpush1.bf16.msra.mxu0 %v1636_v1  ;;  %1507 = vmatpush1.bf16.msra.mxu1 %v1636_v1 }
  0x2d   :  { %1475 = vmatprep.subr.bf16.mxu0 %v1635_v0  ;;  %1508 = vmatprep.subr.bf16.mxu1 %v1635_v0 }
  0x30   :  { %1476 = vmatpush1.bf16.msra.mxu0 %v1636_v1  ;;  %1509 = vmatpush1.bf16.msra.mxu1 %v1636_v1 }
  0x31   :  { %1477 = vmatprep.subr.bf16.mxu0 %v1635_v0  ;;  %1510 = vmatprep.subr.bf16.mxu1 %v1635_v0 }
  0x34   :  { %1478 = vmatpush1.bf16.msra.mxu0 %v1636_v1  ;;  %1511 = vmatpush1.bf16.msra.mxu1 %v1636_v1 }
  0x35   :  { %1479 = vmatprep.subr.bf16.mxu0 %v1635_v0  ;;  %1512 = vmatprep.subr.bf16.mxu1 %v1635_v0 }
  0x38   :  { %1480 = vmatpush1.bf16.msra.mxu0 %v1636_v1  ;;  %1513 = vmatpush1.bf16.msra.mxu1 %v1636_v1 }
  0x39   :  { %1481 = vmatprep.subr.bf16.mxu0 %v1635_v0  ;;  %1514 = vmatprep.subr.bf16.mxu1 %v1635_v0 }
  0x3c   :  { %1482 = vmatpush1.bf16.msra.mxu0 %v1636_v1  ;;  %1515 = vmatpush1.bf16.msra.mxu1 %v1636_v1 }
  0x3d   :  { %1483 = vmatprep.subr.bf16.mxu0 %v1635_v0  ;;  %1516 = vmatprep.subr.bf16.mxu1 %v1635_v0 }
  0x40   :  { %1484 = vmatpush1.bf16.msra.mxu0 %v1636_v1  ;;  %1517 = vmatpush1.bf16.msra.mxu1 %v1636_v1 }
  0x41   :  { %1485 = vmatprep.subr.bf16.mxu0 %v1635_v0  ;;  %1518 = vmatprep.subr.bf16.mxu1 %v1635_v0 }
  0x44   :  { %1486 = vmatpush1.bf16.msra.mxu0 %v1636_v1  ;;  %1519 = vmatpush1.bf16.msra.mxu1 %v1636_v1 }
  0x45   :  { %1487 = vmatprep.subr.bf16.mxu0 %v1635_v0  ;;  %1520 = vmatprep.subr.bf16.mxu1 %v1635_v0 }
  0x48   :  { %1488 = vmatpush1.bf16.msra.mxu0 %v1636_v1  ;;  %1521 = vmatpush1.bf16.msra.mxu1 %v1636_v1 }
  0x49   :  { %1489 = vmatprep.subr.bf16.mxu0 %v1635_v0  ;;  %1522 = vmatprep.subr.bf16.mxu1 %v1635_v0 }
  0x4c   :  { %1490 = vmatpush1.bf16.msra.mxu0 %v1636_v1  ;;  %1523 = vmatpush1.bf16.msra.mxu1 %v1636_v1 }
  0x4d   :  { %1491 = vmatprep.subr.bf16.mxu0 %v1635_v0  ;;  %1524 = vmatprep.subr.bf16.mxu1 %v1635_v0  ;;  %v1939_v0 = vld [vmem:[#allocation2 + $0x1e0] sm:$0xff] }
  0x4e   :  { %2268 = vst [vmem:[#allocation18_spill] sm:$0xff] %v1939_v0 }
  0x50   :  { %1493 = vmatpush1.bf16.msk.msra.mxu0 %vm1492_vm3, %v1636_v1  ;;  %1526 = vmatpush1.bf16.msk.msra.mxu1 %vm1492_vm3, %v1636_v1  ;;  %v1941_v1 = vld [vmem:[#allocation2 + $0x1f8] sm:$0xff] }
  0x51   :  { %2269 = vst [vmem:[#allocation19_spill] sm:$0xff] %v1941_v1 }
  0x53   :  { %272 = vmatmul.mubr.f32.vlgmr.msra.gmra.mrb[0].mxu0 %v1728_v3 }
  0x54   :  { %1389 = vmatprep.mubr.msk.f32.mxu0 %vm94_vm0, %v1731_v4 }
  0x57   :  { %277 = vmatmul.mubr.f32.gmra.mrb[2].mxu0 %v1736_v5 }
  0x58   :  { %1390 = vmatprep.mubr.msk.f32.mxu0 %vm94_vm0, %v1738_v6 }
  0x5b   :  { %282 = vmatmul.mubr.f32.gmra.mrb[4].mxu0 %v1743_v7 }
  0x5c   :  { %1391 = vmatprep.mubr.msk.f32.mxu0 %vm94_vm0, %v1745_v8 }
  0x5f   :  { %287 = vmatmul.mubr.f32.gmra.mrb[6].mxu0 %v1750_v9 }
  0x60   :  { %1392 = vmatprep.mubr.msk.f32.mxu0 %vm94_vm0, %v1752_v10 }
  0x63   :  { %292 = vmatmul.mubr.f32.gmra.mrb[8].mxu0 %v1757_v11 }
  0x64   :  { %1393 = vmatprep.mubr.msk.f32.mxu0 %vm94_vm0, %v1759_v12 }
  0x67   :  { %297 = vmatmul.mubr.f32.gmra.mrb[10].mxu0 %v1764_v13 }
  0x68   :  { %1394 = vmatprep.mubr.msk.f32.mxu0 %vm94_vm0, %v1766_v14 }
  0x6b   :  { %302 = vmatmul.mubr.f32.gmra.mrb[12].mxu0 %v1771_v15 }
  0x6c   :  { %1395 = vmatprep.mubr.msk.f32.mxu0 %vm94_vm0, %v1773_v16 }
  0x6f   :  { %307 = vmatmul.mubr.f32.gmra.mrb[14].mxu0 %v1778_v17 }
  0x70   :  { %1396 = vmatprep.mubr.msk.f32.mxu0 %vm94_vm0, %v1780_v18 }
  0x73   :  { %312 = vmatmul.mubr.f32.gmra.mrb[16].mxu0 %v1785_v19 }
  0x74   :  { %1397 = vmatprep.mubr.msk.f32.mxu0 %vm94_vm0, %v1787_v20 }
  0x77   :  { %317 = vmatmul.mubr.f32.gmra.mrb[18].mxu0 %v1792_v21 }
  0x78   :  { %1398 = vmatprep.mubr.msk.f32.mxu0 %vm94_vm0, %v1794_v22 }
  0x7b   :  { %322 = vmatmul.mubr.f32.gmra.mrb[20].mxu0 %v1799_v23 }
  0x7c   :  { %1399 = vmatprep.mubr.msk.f32.mxu0 %vm94_vm0, %v1801_v24 }
  0x7f   :  { %327 = vmatmul.mubr.f32.gmra.mrb[22].mxu0 %v1806_v25 }
  0x80   :  { %1400 = vmatprep.mubr.msk.f32.mxu0 %vm94_vm0, %v1808_v26 }
  0x83   :  { %332 = vmatmul.mubr.f32.gmra.mrb[24].mxu0 %v1813_v27 }
  0x84   :  { %1401 = vmatprep.mubr.msk.f32.mxu0 %vm94_vm0, %v1815_v28 }
  0x87   :  { %337 = vmatmul.mubr.f32.gmra.mrb[26].mxu0 %v1820_v29 }
  0x88   :  { %1402 = vmatprep.mubr.msk.f32.mxu0 %vm94_vm0, %v1822_v30 }
  0x8b   :  { %342 = vmatmul.mubr.f32.gmra.mrb[28].mxu0 %v1827_v31 }
  0x8c   :  { %1403 = vmatprep.mubr.msk.f32.mxu0 %vm94_vm0, %v1829_v32 }
  0x8f   :  { %347 = vmatmul.mubr.f32.gmra.mrb[30].mxu0 %v1834_v33 }
  0x90   :  { %1404 = vmatprep.mubr.msk.f32.mxu0 %vm94_vm0, %v1836_v34 }
  0x93   :  { %352 = vmatmul.mubr.f32.gmra.mrb[32].mxu0 %v1841_v35 }
  0x94   :  { %1405 = vmatprep.mubr.msk.f32.mxu0 %vm94_vm0, %v1843_v36 }
  0x97   :  { %357 = vmatmul.mubr.f32.gmra.mrb[34].mxu0 %v1848_v37 }
  0x98   :  { %1406 = vmatprep.mubr.msk.f32.mxu0 %vm94_vm0, %v1850_v38 }
  0x9b   :  { %362 = vmatmul.mubr.f32.gmra.mrb[36].mxu0 %v1855_v39 }
  0x9c   :  { %1407 = vmatprep.mubr.msk.f32.mxu0 %vm94_vm0, %v1857_v40 }
  0x9f   :  { %367 = vmatmul.mubr.f32.gmra.mrb[38].mxu0 %v1862_v41 }
  0xa0   :  { %1408 = vmatprep.mubr.msk.f32.mxu0 %vm94_vm0, %v1864_v42 }
  0xa3   :  { %372 = vmatmul.mubr.f32.gmra.mrb[40].mxu0 %v1869_v43 }
  0xa4   :  { %1409 = vmatprep.mubr.msk.f32.mxu0 %vm94_vm0, %v1871_v44 }
  0xa7   :  { %377 = vmatmul.mubr.f32.gmra.mrb[42].mxu0 %v1876_v45 }
  0xa8   :  { %1410 = vmatprep.mubr.msk.f32.mxu0 %vm94_vm0, %v1878_v46 }
  0xab   :  { %382 = vmatmul.mubr.f32.gmra.mrb[44].mxu0 %v1883_v47 }
  0xac   :  { %1411 = vmatprep.mubr.msk.f32.mxu0 %vm94_vm0, %v1885_v49 }
  0xaf   :  { %387 = vmatmul.mubr.f32.gmra.mrb[46].mxu0 %v1890_v50 }
  0xb0   :  { %1412 = vmatprep.mubr.msk.f32.mxu0 %vm94_vm0, %v1892_v51 }
  0xb3   :  { %392 = vmatmul.mubr.f32.gmra.mrb[48].mxu0 %v1897_v52 }
  0xb4   :  { %1413 = vmatprep.mubr.msk.f32.mxu0 %vm94_vm0, %v1899_v53 }
  0xb7   :  { %397 = vmatmul.mubr.f32.gmra.mrb[50].mxu0 %v1904_v54 }
  0xb8   :  { %1414 = vmatprep.mubr.msk.f32.mxu0 %vm94_vm0, %v1906_v55 }
  0xbb   :  { %402 = vmatmul.mubr.f32.gmra.mrb[52].mxu0 %v1911_v56 }
  0xbc   :  { %1415 = vmatprep.mubr.msk.f32.mxu0 %vm94_vm0, %v1913_v57 }
  0xbf   :  { %407 = vmatmul.mubr.f32.gmra.mrb[54].mxu0 %v1918_v58 }
  0xc0   :  { %1416 = vmatprep.mubr.msk.f32.mxu0 %vm94_vm0, %v1920_v59 }
  0xc3   :  { %412 = vmatmul.mubr.f32.gmra.mrb[56].mxu0 %v1925_v60 }
  0xc4   :  { %1417 = vmatprep.mubr.msk.f32.mxu0 %vm94_vm0, %v1927_v61  ;;  %v1948_v61 = vld [vmem:[#allocation2 + $0x208] sm:$0xff] }
  0xc5   :  { %2271 = vst [vmem:[#allocation21_spill] sm:$0xff] %v1948_v61 }
  0xc7   :  { %417 = vmatmul.mubr.f32.gmra.mrb[58].mxu0 %v1932_v62  ;;  %v1953_v62 = vld [vmem:[#allocation2 + $0x200] sm:$0xff] }
  0xc8   :  { %1418 = vmatprep.mubr.msk.f32.mxu0 %vm94_vm0, %v1934_v63  ;;  %2272 = vst [vmem:[#allocation22_spill] sm:$0xff] %v1953_v62  ;;  %v1955_v63 = vld [vmem:[#allocation2 + $0x218] sm:$0xff] }
  0xc9   :  { %2273 = vst [vmem:[#allocation23_spill] sm:$0xff] %v1955_v63 }
  0xcb   :  { %422 = vmatmul.mubr.f32.gmra.mrb[60].mxu0 %v1939_v0  ;;  %v1960_v0 = vld [vmem:[#allocation2 + $0x210] sm:$0xff] }
  0xcc   :  { %1419 = vmatprep.mubr.msk.f32.mxu0 %vm94_vm0, %v1941_v1  ;;  %2274 = vst [vmem:[#allocation24_spill] sm:$0xff] %v1960_v0  ;;  %v1962_v1 = vld [vmem:[#allocation2 + $0x228] sm:$0xff] }
  0xcd   :  { %2275 = vst [vmem:[#allocation25_spill] sm:$0xff] %v1962_v1 }
  0xcf   :  { %427 = vmatmul.mubr.f32.gmra.mrb[62].mxu0 %v1946_v48  ;;  %v1967_v48 = vld [vmem:[#allocation2 + $0x220] sm:$0xff] }
  0xd0   :  { %1420 = vmatprep.mubr.msk.f32.mxu0 %vm94_vm0, %v1948_v61  ;;  %2276 = vst [vmem:[#allocation26_spill] sm:$0xff] %v1967_v48  ;;  %v1969_v61 = vld [vmem:[#allocation2 + $0x238] sm:$0xff] }
  0xd1   :  { %2277 = vst [vmem:[#allocation27_spill] sm:$0xff] %v1969_v61 }
  0xd3   :  { %432 = vmatmul.mubr.f32.gmra.mrb[64].mxu0 %v1953_v62  ;;  %v1974_v62 = vld [vmem:[#allocation2 + $0x230] sm:$0xff] }
  0xd4   :  { %1421 = vmatprep.mubr.msk.f32.mxu0 %vm94_vm0, %v1955_v63  ;;  %2278 = vst [vmem:[#allocation28_spill] sm:$0xff] %v1974_v62 }
  0xd7   :  { %437 = vmatmul.mubr.f32.gmra.mrb[66].mxu0 %v1960_v0 }
  0xd8   :  { %1422 = vmatprep.mubr.msk.f32.mxu0 %vm94_vm0, %v1962_v1 }
  0xdb   :  { %442 = vmatmul.mubr.f32.gmra.mrb[68].mxu0 %v1967_v48 }
  0xdc   :  { %1423 = vmatprep.mubr.msk.f32.mxu0 %vm94_vm0, %v1969_v61 }
  0xdf   :  { %447 = vmatmul.mubr.f32.gmra.mrb[70].mxu0 %v1974_v62 }
 0x126   :  { %v273_v63 = vpop.f32.mrb[0].mxu0 }
 0x127   :  { %v452_v59 = vmul.f32 0.004, %v273_v63  ;;  %v275_v60 = vpop.f32.mrb[1].mxu0 }
 0x129   :  { %490 = vperm.xlu0 %1534, %v452_v59  }
 0x12a   :  { %v278_v0 = vpop.f32.mrb[2].mxu0 }
 0x12b   :  { %v453_v57 = vmul.f32 0.004, %v278_v0  ;;  %v280_v1 = vpop.f32.mrb[3].mxu0 }
 0x12d   :  { %495 = vperm.xlu0 %1534, %v453_v57  }
 0x12e   :  { %v283_v58 = vpop.f32.mrb[4].mxu0 }
 0x12f   :  { %v454_v55 = vmul.f32 0.004, %v283_v58  ;;  %v285_v56 = vpop.f32.mrb[5].mxu0 }
 0x131   :  { %500 = vperm.xlu1 %1535, %v454_v55  }
 0x132   :  { %v288_v48 = vpop.f32.mrb[6].mxu0 }
 0x133   :  { %v455_v53 = vmul.f32 0.004, %v288_v48  ;;  %v290_v54 = vpop.f32.mrb[7].mxu0 }
 0x135   :  { %505 = vperm.xlu1 %1535, %v455_v53  }
 0x136   :  { %v293_v61 = vpop.f32.mrb[8].mxu0 }
 0x137   :  { %v456_v51 = vmul.f32 0.004, %v293_v61  ;;  %v295_v52 = vpop.f32.mrb[9].mxu0 }
 0x139   :  { %510 = vperm.xlu0 %1534, %v456_v51  }
 0x13a   :  { %v298_v62 = vpop.f32.mrb[10].mxu0 }
 0x13b   :  { %v457_v63 = vmul.f32 0.004, %v298_v62  ;;  %v300_v60 = vpop.f32.mrb[11].mxu0 }
 0x13d   :  { %515 = vperm.xlu1 %1535, %v457_v63  }
 0x13e   :  { %v303_v59 = vpop.f32.mrb[12].mxu0 }
 0x13f   :  { %v458_v0 = vmul.f32 0.004, %v303_v59  ;;  %v305_v1 = vpop.f32.mrb[13].mxu0 }
 0x141   :  { %520 = vperm.xlu0 %1534, %v458_v0  }
 0x142   :  { %v308_v57 = vpop.f32.mrb[14].mxu0 }
 0x143   :  { %v459_v58 = vmul.f32 0.004, %v308_v57  ;;  %v310_v56 = vpop.f32.mrb[15].mxu0 }
 0x145   :  { %525 = vperm.xlu1 %1535, %v459_v58  }
 0x146   :  { %v313_v55 = vpop.f32.mrb[16].mxu0 }
 0x147   :  { %v460_v48 = vmul.f32 0.004, %v313_v55  ;;  %v315_v54 = vpop.f32.mrb[17].mxu0 }
 0x149   :  { %530 = vperm.xlu0 %1534, %v460_v48  }
 0x14a   :  { %v318_v53 = vpop.f32.mrb[18].mxu0 }
 0x14b   :  { %v461_v61 = vmul.f32 0.004, %v318_v53  ;;  %v320_v52 = vpop.f32.mrb[19].mxu0 }
 0x14d   :  { %535 = vperm.xlu1 %1535, %v461_v61  }
 0x14e   :  { %v323_v51 = vpop.f32.mrb[20].mxu0 }
 0x14f   :  { %v462_v62 = vmul.f32 0.004, %v323_v51  ;;  %v325_v60 = vpop.f32.mrb[21].mxu0 }
 0x151   :  { %540 = vperm.xlu0 %1534, %v462_v62  }
 0x152   :  { %v328_v63 = vpop.f32.mrb[22].mxu0 }
 0x153   :  { %v463_v59 = vmul.f32 0.004, %v328_v63  ;;  %v330_v1 = vpop.f32.mrb[23].mxu0 }
 0x155   :  { %545 = vperm.xlu1 %1535, %v463_v59  }
 0x156   :  { %v333_v0 = vpop.f32.mrb[24].mxu0 }
 0x157   :  { %v464_v57 = vmul.f32 0.004, %v333_v0  ;;  %v335_v56 = vpop.f32.mrb[25].mxu0 }
 0x159   :  { %550 = vperm.xlu0 %1534, %v464_v57  }
 0x15a   :  { %v338_v58 = vpop.f32.mrb[26].mxu0 }
 0x15b   :  { %v465_v55 = vmul.f32 0.004, %v338_v58  ;;  %v340_v54 = vpop.f32.mrb[27].mxu0 }
 0x15d   :  { %555 = vperm.xlu1 %1535, %v465_v55  }
 0x15e   :  { %v343_v48 = vpop.f32.mrb[28].mxu0 }
 0x15f   :  { %v466_v53 = vmul.f32 0.004, %v343_v48  ;;  %v345_v52 = vpop.f32.mrb[29].mxu0 }
 0x161   :  { %560 = vperm.xlu0 %1534, %v466_v53  }
 0x162   :  { %v348_v61 = vpop.f32.mrb[30].mxu0 }
 0x163   :  { %v467_v51 = vmul.f32 0.004, %v348_v61  ;;  %v350_v60 = vpop.f32.mrb[31].mxu0 }
 0x165   :  { %565 = vperm.xlu1 %1535, %v467_v51  }
 0x166   :  { %v353_v62 = vpop.f32.mrb[32].mxu0 }
 0x167   :  { %v468_v63 = vmul.f32 0.004, %v353_v62  ;;  %v355_v1 = vpop.f32.mrb[33].mxu0 }
 0x169   :  { %570 = vperm.xlu0 %1534, %v468_v63  }
 0x16a   :  { %v358_v59 = vpop.f32.mrb[34].mxu0 }
 0x16b   :  { %v469_v0 = vmul.f32 0.004, %v358_v59  ;;  %v360_v56 = vpop.f32.mrb[35].mxu0 }
 0x16d   :  { %575 = vperm.xlu1 %1535, %v469_v0  }
 0x16e   :  { %v363_v57 = vpop.f32.mrb[36].mxu0 }
 0x16f   :  { %v470_v58 = vmul.f32 0.004, %v363_v57  ;;  %v365_v54 = vpop.f32.mrb[37].mxu0 }
 0x171   :  { %580 = vperm.xlu0 %1534, %v470_v58  }
 0x172   :  { %v368_v55 = vpop.f32.mrb[38].mxu0 }
 0x173   :  { %v471_v48 = vmul.f32 0.004, %v368_v55  ;;  %v370_v52 = vpop.f32.mrb[39].mxu0 }
 0x175   :  { %585 = vperm.xlu1 %1535, %v471_v48  }
 0x176   :  { %v373_v53 = vpop.f32.mrb[40].mxu0 }
 0x177   :  { %v472_v61 = vmul.f32 0.004, %v373_v53  ;;  %v375_v60 = vpop.f32.mrb[41].mxu0 }
 0x179   :  { %590 = vperm.xlu0 %1534, %v472_v61  }
 0x17a   :  { %v378_v51 = vpop.f32.mrb[42].mxu0 }
 0x17b   :  { %v473_v62 = vmul.f32 0.004, %v378_v51  ;;  %v380_v1 = vpop.f32.mrb[43].mxu0 }
 0x17d   :  { %595 = vperm.xlu1 %1535, %v473_v62  }
 0x17e   :  { %v383_v63 = vpop.f32.mrb[44].mxu0 }
 0x17f   :  { %v474_v59 = vmul.f32 0.004, %v383_v63  ;;  %v385_v56 = vpop.f32.mrb[45].mxu0 }
 0x181   :  { %600 = vperm.xlu0 %1534, %v474_v59  }
 0x182   :  { %v388_v0 = vpop.f32.mrb[46].mxu0 }
 0x183   :  { %v475_v57 = vmul.f32 0.004, %v388_v0  ;;  %v390_v54 = vpop.f32.mrb[47].mxu0 }
 0x185   :  { %605 = vperm.xlu1 %1535, %v475_v57  }
 0x186   :  { %v393_v58 = vpop.f32.mrb[48].mxu0 }
 0x187   :  { %v476_v55 = vmul.f32 0.004, %v393_v58  ;;  %v395_v52 = vpop.f32.mrb[49].mxu0 }
 0x189   :  { %610 = vperm.xlu0 %1534, %v476_v55  }
 0x18a   :  { %v398_v48 = vpop.f32.mrb[50].mxu0 }
 0x18b   :  { %v477_v53 = vmul.f32 0.004, %v398_v48  ;;  %v400_v60 = vpop.f32.mrb[51].mxu0 }
 0x18d   :  { %615 = vperm.xlu1 %1535, %v477_v53  }
 0x18e   :  { %v403_v61 = vpop.f32.mrb[52].mxu0 }
 0x18f   :  { %v478_v51 = vmul.f32 0.004, %v403_v61  ;;  %v405_v1 = vpop.f32.mrb[53].mxu0 }
 0x191   :  { %620 = vperm.xlu0 %1534, %v478_v51  }
 0x192   :  { %v408_v62 = vpop.f32.mrb[54].mxu0 }
 0x193   :  { %v479_v63 = vmul.f32 0.004, %v408_v62  ;;  %v410_v56 = vpop.f32.mrb[55].mxu0 }
 0x195   :  { %625 = vperm.xlu1 %1535, %v479_v63  }
 0x196   :  { %v413_v59 = vpop.f32.mrb[56].mxu0 }
 0x197   :  { %v480_v0 = vmul.f32 0.004, %v413_v59  ;;  %v415_v54 = vpop.f32.mrb[57].mxu0 }
 0x199   :  { %630 = vperm.xlu0 %1534, %v480_v0  }
 0x19a   :  { %v418_v57 = vpop.f32.mrb[58].mxu0 }
 0x19b   :  { %v481_v58 = vmul.f32 0.004, %v418_v57  ;;  %v420_v52 = vpop.f32.mrb[59].mxu0 }
 0x19d   :  { %635 = vperm.xlu1 %1535, %v481_v58  }
 0x19e   :  { %v423_v55 = vpop.f32.mrb[60].mxu0 }
 0x19f   :  { %v482_v48 = vmul.f32 0.004, %v423_v55  ;;  %v425_v60 = vpop.f32.mrb[61].mxu0 }
 0x1a1   :  { %640 = vperm.xlu0 %1534, %v482_v48  }
 0x1a2   :  { %v428_v53 = vpop.f32.mrb[62].mxu0 }
 0x1a3   :  { %v483_v61 = vmul.f32 0.004, %v428_v53  ;;  %v430_v1 = vpop.f32.mrb[63].mxu0 }
 0x1a5   :  { %645 = vperm.xlu1 %1535, %v483_v61  }
 0x1a6   :  { %v433_v51 = vpop.f32.mrb[64].mxu0 }
 0x1a7   :  { %v484_v62 = vmul.f32 0.004, %v433_v51  ;;  %v435_v56 = vpop.f32.mrb[65].mxu0 }
 0x1a8   :  { %v491_v63 = vpop.permute.xlu0 %490 }
 0x1a9   :  { %v668_v59 = vsub.f32 %v1728_v3, %v491_v63  ;;  %v669_v0 = vsub.f32 %v1670_v2, %v491_v63  ;;  %650 = vperm.xlu0 %1534, %v484_v62  }
 0x1aa   :  { %v438_v54 = vpop.f32.mrb[66].mxu0 }
 0x1ab   :  { %v740_v57 = vmul.f32 %v668_v59, %v668_v59  ;;  %v485_v58 = vmul.f32 0.004, %v438_v54  ;;  %v440_v52 = vpop.f32.mrb[67].mxu0  ;;  %v741_v55 = vmul.f32 %v669_v0, %v669_v0 }
 0x1ac   :  { %v496_v60 = vpop.permute.xlu0 %495 }
 0x1ad   :  { %v670_v48 = vsub.f32 %v1736_v5, %v496_v60  ;;  %v671_v53 = vsub.f32 %v1731_v4, %v496_v60  ;;  %1425 = vmatprep.mubr.msk.f32.mxu1 %vm94_vm0, %v741_v55  ;;  %655 = vperm.xlu1 %1535, %v485_v58  }
 0x1ae   :  { %v443_v61 = vpop.f32.mrb[68].mxu0  ;;  %985 = vmatmul.mubr.f32.vlgmr.msra.gmra.mrb[0].mxu1 %v740_v57 }
 0x1af   :  { %v742_v1 = vmul.f32 %v670_v48, %v670_v48  ;;  %v743_v3 = vmul.f32 %v671_v53, %v671_v53  ;;  %v486_v51 = vmul.f32 0.004, %v443_v61  ;;  %v445_v2 = vpop.f32.mrb[69].mxu0 }
 0x1b0   :  { %v501_v62 = vpop.permute.xlu1 %500 }
 0x1b1   :  { %v672_v56 = vsub.f32 %v1743_v7, %v501_v62  ;;  %v673_v63 = vsub.f32 %v1738_v6, %v501_v62  ;;  %1426 = vmatprep.mubr.msk.f32.mxu1 %vm94_vm0, %v743_v3  ;;  %660 = vperm.xlu0 %1534, %v486_v51  }
 0x1b2   :  { %v448_v5 = vpop.f32.mrb[70].mxu0  ;;  %990 = vmatmul.mubr.f32.gmra.mrb[2].mxu1 %v742_v1 }
 0x1b3   :  { %v744_v4 = vmul.f32 %v672_v56, %v672_v56  ;;  %v745_v59 = vmul.f32 %v673_v63, %v673_v63  ;;  %v487_v0 = vmul.f32 0.004, %v448_v5  ;;  %v450_v54 = vpop.f32.mrb[71].mxu0 }
 0x1b4   :  { %v506_v58 = vpop.permute.xlu1 %505 }
 0x1b5   :  { %v674_v57 = vsub.f32 %v1750_v9, %v506_v58  ;;  %v675_v52 = vsub.f32 %v1745_v8, %v506_v58  ;;  %1427 = vmatprep.mubr.msk.f32.mxu1 %vm94_vm0, %v745_v59  ;;  %665 = vperm.xlu1 %1535, %v487_v0  }
 0x1b6   :  { %995 = vmatmul.mubr.f32.gmra.mrb[4].mxu1 %v744_v4 }
 0x1b7   :  { %v746_v7 = vmul.f32 %v674_v57, %v674_v57  ;;  %v747_v6 = vmul.f32 %v675_v52, %v675_v52 }
 0x1b8   :  { %v511_v55 = vpop.permute.xlu0 %510 }
 0x1b9   :  { %v676_v60 = vsub.f32 %v1757_v11, %v511_v55  ;;  %v677_v48 = vsub.f32 %v1752_v10, %v511_v55  ;;  %1428 = vmatprep.mubr.msk.f32.mxu1 %vm94_vm0, %v747_v6 }
 0x1ba   :  { %1000 = vmatmul.mubr.f32.gmra.mrb[6].mxu1 %v746_v7 }
 0x1bb   :  { %v748_v53 = vmul.f32 %v676_v60, %v676_v60  ;;  %v749_v61 = vmul.f32 %v677_v48, %v677_v48 }
 0x1bc   :  { %v516_v1 = vpop.permute.xlu1 %515 }
 0x1bd   :  { %v678_v9 = vsub.f32 %v1764_v13, %v516_v1  ;;  %v679_v8 = vsub.f32 %v1759_v12, %v516_v1  ;;  %1429 = vmatprep.mubr.msk.f32.mxu1 %vm94_vm0, %v749_v61 }
 0x1be   :  { %1005 = vmatmul.mubr.f32.gmra.mrb[8].mxu1 %v748_v53 }
 0x1bf   :  { %v750_v3 = vmul.f32 %v678_v9, %v678_v9  ;;  %v751_v51 = vmul.f32 %v679_v8, %v679_v8 }
 0x1c0   :  { %v521_v2 = vpop.permute.xlu0 %520 }
 0x1c1   :  { %v680_v11 = vsub.f32 %v1771_v15, %v521_v2  ;;  %v681_v10 = vsub.f32 %v1766_v14, %v521_v2  ;;  %1430 = vmatprep.mubr.msk.f32.mxu1 %vm94_vm0, %v751_v51 }
 0x1c2   :  { %1010 = vmatmul.mubr.f32.gmra.mrb[10].mxu1 %v750_v3 }
 0x1c3   :  { %v752_v62 = vmul.f32 %v680_v11, %v680_v11  ;;  %v753_v56 = vmul.f32 %v681_v10, %v681_v10 }
 0x1c4   :  { %v526_v63 = vpop.permute.xlu1 %525 }
 0x1c5   :  { %v682_v13 = vsub.f32 %v1778_v17, %v526_v63  ;;  %v683_v12 = vsub.f32 %v1773_v16, %v526_v63  ;;  %1431 = vmatprep.mubr.msk.f32.mxu1 %vm94_vm0, %v753_v56 }
 0x1c6   :  { %1015 = vmatmul.mubr.f32.gmra.mrb[12].mxu1 %v752_v62 }
 0x1c7   :  { %v754_v5 = vmul.f32 %v682_v13, %v682_v13  ;;  %v755_v4 = vmul.f32 %v683_v12, %v683_v12 }
 0x1c8   :  { %v531_v59 = vpop.permute.xlu0 %530 }
 0x1c9   :  { %v684_v15 = vsub.f32 %v1785_v19, %v531_v59  ;;  %v685_v14 = vsub.f32 %v1780_v18, %v531_v59  ;;  %1432 = vmatprep.mubr.msk.f32.mxu1 %vm94_vm0, %v755_v4 }
 0x1ca   :  { %1020 = vmatmul.mubr.f32.gmra.mrb[14].mxu1 %v754_v5 }
 0x1cb   :  { %v756_v0 = vmul.f32 %v684_v15, %v684_v15  ;;  %v757_v54 = vmul.f32 %v685_v14, %v685_v14 }
 0x1cc   :  { %v536_v58 = vpop.permute.xlu1 %535 }
 0x1cd   :  { %v686_v17 = vsub.f32 %v1792_v21, %v536_v58  ;;  %v687_v16 = vsub.f32 %v1787_v20, %v536_v58  ;;  %1433 = vmatprep.mubr.msk.f32.mxu1 %vm94_vm0, %v757_v54 }
 0x1ce   :  { %1025 = vmatmul.mubr.f32.gmra.mrb[16].mxu1 %v756_v0 }
 0x1cf   :  { %v758_v57 = vmul.f32 %v686_v17, %v686_v17  ;;  %v759_v52 = vmul.f32 %v687_v16, %v687_v16 }
 0x1d0   :  { %v541_v7 = vpop.permute.xlu0 %540 }
 0x1d1   :  { %v688_v19 = vsub.f32 %v1799_v23, %v541_v7  ;;  %v689_v18 = vsub.f32 %v1794_v22, %v541_v7  ;;  %1434 = vmatprep.mubr.msk.f32.mxu1 %vm94_vm0, %v759_v52 }
 0x1d2   :  { %1030 = vmatmul.mubr.f32.gmra.mrb[18].mxu1 %v758_v57 }
 0x1d3   :  { %v760_v6 = vmul.f32 %v688_v19, %v688_v19  ;;  %v761_v55 = vmul.f32 %v689_v18, %v689_v18 }
 0x1d4   :  { %v546_v60 = vpop.permute.xlu1 %545 }
 0x1d5   :  { %v690_v21 = vsub.f32 %v1806_v25, %v546_v60  ;;  %v691_v20 = vsub.f32 %v1801_v24, %v546_v60  ;;  %1435 = vmatprep.mubr.msk.f32.mxu1 %vm94_vm0, %v761_v55 }
 0x1d6   :  { %1035 = vmatmul.mubr.f32.gmra.mrb[20].mxu1 %v760_v6 }
 0x1d7   :  { %v762_v48 = vmul.f32 %v690_v21, %v690_v21  ;;  %v763_v53 = vmul.f32 %v691_v20, %v691_v20 }
 0x1d8   :  { %v551_v61 = vpop.permute.xlu0 %550 }
 0x1d9   :  { %v692_v23 = vsub.f32 %v1813_v27, %v551_v61  ;;  %v693_v22 = vsub.f32 %v1808_v26, %v551_v61  ;;  %1436 = vmatprep.mubr.msk.f32.mxu1 %vm94_vm0, %v763_v53 }
 0x1da   :  { %1040 = vmatmul.mubr.f32.gmra.mrb[22].mxu1 %v762_v48 }
 0x1db   :  { %v764_v1 = vmul.f32 %v692_v23, %v692_v23  ;;  %v765_v9 = vmul.f32 %v693_v22, %v693_v22  ;;  %v2279_v23 = vld [vmem:[#allocation6_spill] sm:$0xff]  ;;  %v2280_v22 = vld [vmem:[#allocation5_spill] sm:$0xff] }
 0x1dc   :  { %v556_v8 = vpop.permute.xlu1 %555 }
 0x1dd   :  { %v694_v25 = vsub.f32 %v1820_v29, %v556_v8  ;;  %v695_v24 = vsub.f32 %v1815_v28, %v556_v8  ;;  %1437 = vmatprep.mubr.msk.f32.mxu1 %vm94_vm0, %v765_v9 }
 0x1de   :  { %1045 = vmatmul.mubr.f32.gmra.mrb[24].mxu1 %v764_v1 }
 0x1df   :  { %v766_v3 = vmul.f32 %v694_v25, %v694_v25  ;;  %v767_v51 = vmul.f32 %v695_v24, %v695_v24  ;;  %v2281_v25 = vld [vmem:[#allocation8_spill] sm:$0xff]  ;;  %v2282_v24 = vld [vmem:[#allocation7_spill] sm:$0xff] }
 0x1e0   :  { %v561_v2 = vpop.permute.xlu0 %560 }
 0x1e1   :  { %v696_v27 = vsub.f32 %v1827_v31, %v561_v2  ;;  %v697_v26 = vsub.f32 %v1822_v30, %v561_v2  ;;  %1438 = vmatprep.mubr.msk.f32.mxu1 %vm94_vm0, %v767_v51 }
 0x1e2   :  { %1050 = vmatmul.mubr.f32.gmra.mrb[26].mxu1 %v766_v3 }
 0x1e3   :  { %v768_v11 = vmul.f32 %v696_v27, %v696_v27  ;;  %v769_v10 = vmul.f32 %v697_v26, %v697_v26  ;;  %v2283_v27 = vld [vmem:[#allocation10_spill] sm:$0xff] }
 0x1e4   :  { %v566_v62 = vpop.permute.xlu1 %565 }
 0x1e5   :  { %v698_v29 = vsub.f32 %v1834_v33, %v566_v62  ;;  %v699_v28 = vsub.f32 %v1829_v32, %v566_v62  ;;  %1439 = vmatprep.mubr.msk.f32.mxu1 %vm94_vm0, %v769_v10 }
 0x1e6   :  { %1055 = vmatmul.mubr.f32.gmra.mrb[28].mxu1 %v768_v11  ;;  %v2284_v11 = vld [vmem:[#allocation9_spill] sm:$0xff] }
 0x1e7   :  { %v770_v56 = vmul.f32 %v698_v29, %v698_v29  ;;  %v771_v63 = vmul.f32 %v699_v28, %v699_v28 }
 0x1e8   :  { %v571_v13 = vpop.permute.xlu0 %570 }
 0x1e9   :  { %v700_v31 = vsub.f32 %v1841_v35, %v571_v13  ;;  %v701_v30 = vsub.f32 %v1836_v34, %v571_v13  ;;  %1440 = vmatprep.mubr.msk.f32.mxu1 %vm94_vm0, %v771_v63  ;;  %v2286_v13 = vld [vmem:[#allocation11_spill] sm:$0xff] }
 0x1ea   :  { %1060 = vmatmul.mubr.f32.gmra.mrb[30].mxu1 %v770_v56  ;;  %v2285_v56 = vld [vmem:[#allocation12_spill] sm:$0xff] }
 0x1eb   :  { %v772_v12 = vmul.f32 %v700_v31, %v700_v31  ;;  %v773_v5 = vmul.f32 %v701_v30, %v701_v30 }
 0x1ec   :  { %v576_v4 = vpop.permute.xlu1 %575 }
 0x1ed   :  { %v702_v33 = vsub.f32 %v1848_v37, %v576_v4  ;;  %v703_v32 = vsub.f32 %v1843_v36, %v576_v4  ;;  %1441 = vmatprep.mubr.msk.f32.mxu1 %vm94_vm0, %v773_v5  ;;  %v2287_v4 = vld [vmem:[#allocation14_spill] sm:$0xff] }
 0x1ee   :  { %1065 = vmatmul.mubr.f32.gmra.mrb[32].mxu1 %v772_v12 }
 0x1ef   :  { %v774_v59 = vmul.f32 %v702_v33, %v702_v33  ;;  %v775_v15 = vmul.f32 %v703_v32, %v703_v32  ;;  %v2288_v32 = vld [vmem:[#allocation13_spill] sm:$0xff] }
 0x1f0   :  { %v581_v14 = vpop.permute.xlu0 %580 }
 0x1f1   :  { %v704_v35 = vsub.f32 %v1855_v39, %v581_v14  ;;  %v705_v34 = vsub.f32 %v1850_v38, %v581_v14  ;;  %1442 = vmatprep.mubr.msk.f32.mxu1 %vm94_vm0, %v775_v15 }
 0x1f2   :  { %1070 = vmatmul.mubr.f32.gmra.mrb[34].mxu1 %v774_v59 }
 0x1f3   :  { %v776_v0 = vmul.f32 %v704_v35, %v704_v35  ;;  %v777_v54 = vmul.f32 %v705_v34, %v705_v34  ;;  %v2289_v34 = vld [vmem:[#allocation16_spill] sm:$0xff] }
 0x1f4   :  { %v586_v58 = vpop.permute.xlu1 %585 }
 0x1f5   :  { %v706_v37 = vsub.f32 %v1862_v41, %v586_v58  ;;  %v707_v36 = vsub.f32 %v1857_v40, %v586_v58  ;;  %1443 = vmatprep.mubr.msk.f32.mxu1 %vm94_vm0, %v777_v54  ;;  %v2290_v54 = vld [vmem:[#allocation15_spill] sm:$0xff] }
 0x1f6   :  { %1075 = vmatmul.mubr.f32.gmra.mrb[36].mxu1 %v776_v0 }
 0x1f7   :  { %v778_v17 = vmul.f32 %v706_v37, %v706_v37  ;;  %v779_v16 = vmul.f32 %v707_v36, %v707_v36 }
 0x1f8   :  { %v591_v57 = vpop.permute.xlu0 %590 }
 0x1f9   :  { %v708_v39 = vsub.f32 %v1869_v43, %v591_v57  ;;  %v709_v38 = vsub.f32 %v1864_v42, %v591_v57  ;;  %1444 = vmatprep.mubr.msk.f32.mxu1 %vm94_vm0, %v779_v16  ;;  %v2291_v16 = vld [vmem:[#allocation18_spill] sm:$0xff] }
 0x1fa   :  { %1080 = vmatmul.mubr.f32.gmra.mrb[38].mxu1 %v778_v17 }
 0x1fb   :  { %v780_v52 = vmul.f32 %v708_v39, %v708_v39  ;;  %v781_v7 = vmul.f32 %v709_v38, %v709_v38  ;;  %v2292_v39 = vld [vmem:[#allocation17_spill] sm:$0xff] }
 0x1fc   :  { %v596_v19 = vpop.permute.xlu1 %595 }
 0x1fd   :  { %v710_v41 = vsub.f32 %v1876_v45, %v596_v19  ;;  %v711_v40 = vsub.f32 %v1871_v44, %v596_v19  ;;  %1445 = vmatprep.mubr.msk.f32.mxu1 %vm94_vm0, %v781_v7 }
 0x1fe   :  { %1085 = vmatmul.mubr.f32.gmra.mrb[40].mxu1 %v780_v52 }
 0x1ff   :  { %v782_v18 = vmul.f32 %v710_v41, %v710_v41  ;;  %v783_v6 = vmul.f32 %v711_v40, %v711_v40  ;;  %v2293_v41 = vld [vmem:[#allocation20_spill] sm:$0xff] }
 0x200   :  { %v601_v55 = vpop.permute.xlu0 %600 }
 0x201   :  { %v712_v43 = vsub.f32 %v1883_v47, %v601_v55  ;;  %v713_v42 = vsub.f32 %v1878_v46, %v601_v55  ;;  %1446 = vmatprep.mubr.msk.f32.mxu1 %vm94_vm0, %v783_v6 }
 0x202   :  { %1090 = vmatmul.mubr.f32.gmra.mrb[42].mxu1 %v782_v18  ;;  %v2294_v18 = vld [vmem:[#allocation19_spill] sm:$0xff] }
 0x203   :  { %v784_v60 = vmul.f32 %v712_v43, %v712_v43  ;;  %v785_v21 = vmul.f32 %v713_v42, %v713_v42 }
 0x204   :  { %v606_v20 = vpop.permute.xlu1 %605 }
 0x205   :  { %v714_v45 = vsub.f32 %v1890_v50, %v606_v20  ;;  %v715_v44 = vsub.f32 %v1885_v49, %v606_v20  ;;  %1447 = vmatprep.mubr.msk.f32.mxu1 %vm94_vm0, %v785_v21  ;;  %v2296_v20 = vld [vmem:[#allocation21_spill] sm:$0xff] }
 0x206   :  { %1095 = vmatmul.mubr.f32.gmra.mrb[44].mxu1 %v784_v60  ;;  %v2295_v60 = vld [vmem:[#allocation22_spill] sm:$0xff] }
 0x207   :  { %v786_v48 = vmul.f32 %v714_v45, %v714_v45  ;;  %v787_v53 = vmul.f32 %v715_v44, %v715_v44 }
 0x208   :  { %v611_v61 = vpop.permute.xlu0 %610 }
 0x209   :  { %v716_v47 = vsub.f32 %v2279_v23, %v611_v61  ;;  %v717_v46 = vsub.f32 %v2280_v22, %v611_v61  ;;  %1448 = vmatprep.mubr.msk.f32.mxu1 %vm94_vm0, %v787_v53  ;;  %v2297_v61 = vld [vmem:[#allocation24_spill] sm:$0xff] }
 0x20a   :  { %1100 = vmatmul.mubr.f32.gmra.mrb[46].mxu1 %v786_v48 }
 0x20b   :  { %v788_v1 = vmul.f32 %v716_v47, %v716_v47  ;;  %v789_v9 = vmul.f32 %v717_v46, %v717_v46  ;;  %v2298_v47 = vld [vmem:[#allocation23_spill] sm:$0xff] }
 0x20c   :  { %v616_v8 = vpop.permute.xlu1 %615 }
 0x20d   :  { %v718_v50 = vsub.f32 %v2281_v25, %v616_v8  ;;  %v719_v49 = vsub.f32 %v2282_v24, %v616_v8  ;;  %1449 = vmatprep.mubr.msk.f32.mxu1 %vm94_vm0, %v789_v9  ;;  %v2299_v8 = vld [vmem:[#allocation26_spill] sm:$0xff] }
 0x20e   :  { %1105 = vmatmul.mubr.f32.gmra.mrb[48].mxu1 %v788_v1 }
 0x20f   :  { %v790_v3 = vmul.f32 %v718_v50, %v718_v50  ;;  %v791_v51 = vmul.f32 %v719_v49, %v719_v49  ;;  %v2300_v50 = vld [vmem:[#allocation25_spill] sm:$0xff] }
 0x210   :  { %v621_v2 = vpop.permute.xlu0 %620 }
 0x211   :  { %v720_v26 = vsub.f32 %v2283_v27, %v621_v2  ;;  %v721_v10 = vsub.f32 %v2284_v11, %v621_v2  ;;  %1450 = vmatprep.mubr.msk.f32.mxu1 %vm94_vm0, %v791_v51  ;;  %v2301_v2 = vld [vmem:[#allocation28_spill] sm:$0xff] }
 0x212   :  { %1110 = vmatmul.mubr.f32.gmra.mrb[50].mxu1 %v790_v3 }
 0x213   :  { %v792_v62 = vmul.f32 %v720_v26, %v720_v26  ;;  %v793_v29 = vmul.f32 %v721_v10, %v721_v10  ;;  %v2302_v26 = vld [vmem:[#allocation27_spill] sm:$0xff] }
 0x214   :  { %v626_v28 = vpop.permute.xlu1 %625 }
 0x215   :  { %v722_v63 = vsub.f32 %v2285_v56, %v626_v28  ;;  %v723_v31 = vsub.f32 %v2286_v13, %v626_v28  ;;  %1451 = vmatprep.mubr.msk.f32.mxu1 %vm94_vm0, %v793_v29 }
 0x216   :  { %1115 = vmatmul.mubr.f32.gmra.mrb[52].mxu1 %v792_v62 }
 0x217   :  { %v794_v30 = vmul.f32 %v722_v63, %v722_v63  ;;  %v795_v12 = vmul.f32 %v723_v31, %v723_v31 }
 0x218   :  { %v631_v5 = vpop.permute.xlu0 %630 }
 0x219   :  { %v724_v33 = vsub.f32 %v2287_v4, %v631_v5  ;;  %v725_v59 = vsub.f32 %v2288_v32, %v631_v5  ;;  %1452 = vmatprep.mubr.msk.f32.mxu1 %vm94_vm0, %v795_v12 }
 0x21a   :  { %1120 = vmatmul.mubr.f32.gmra.mrb[54].mxu1 %v794_v30 }
 0x21b   :  { %v796_v15 = vmul.f32 %v724_v33, %v724_v33  ;;  %v797_v14 = vmul.f32 %v725_v59, %v725_v59 }
 0x21c   :  { %v636_v35 = vpop.permute.xlu1 %635 }
 0x21d   :  { %v726_v0 = vsub.f32 %v2289_v34, %v636_v35  ;;  %v727_v58 = vsub.f32 %v2290_v54, %v636_v35  ;;  %1453 = vmatprep.mubr.msk.f32.mxu1 %vm94_vm0, %v797_v14 }
 0x21e   :  { %1125 = vmatmul.mubr.f32.gmra.mrb[56].mxu1 %v796_v15 }
 0x21f   :  { %v798_v37 = vmul.f32 %v726_v0, %v726_v0  ;;  %v799_v36 = vmul.f32 %v727_v58, %v727_v58 }
 0x220   :  { %v641_v17 = vpop.permute.xlu0 %640 }
 0x221   :  { %v728_v57 = vsub.f32 %v2291_v16, %v641_v17  ;;  %v729_v38 = vsub.f32 %v2292_v39, %v641_v17  ;;  %1454 = vmatprep.mubr.msk.f32.mxu1 %vm94_vm0, %v799_v36 }
 0x222   :  { %1130 = vmatmul.mubr.f32.gmra.mrb[58].mxu1 %v798_v37 }
 0x223   :  { %v800_v52 = vmul.f32 %v728_v57, %v728_v57  ;;  %v801_v7 = vmul.f32 %v729_v38, %v729_v38 }
 0x224   :  { %v646_v19 = vpop.permute.xlu1 %645 }
 0x225   :  { %v730_v40 = vsub.f32 %v2293_v41, %v646_v19  ;;  %v731_v6 = vsub.f32 %v2294_v18, %v646_v19  ;;  %1455 = vmatprep.mubr.msk.f32.mxu1 %vm94_vm0, %v801_v7 }
 0x226   :  { %1135 = vmatmul.mubr.f32.gmra.mrb[60].mxu1 %v800_v52 }
 0x227   :  { %v802_v55 = vmul.f32 %v730_v40, %v730_v40  ;;  %v803_v43 = vmul.f32 %v731_v6, %v731_v6 }
 0x228   :  { %v651_v42 = vpop.permute.xlu0 %650 }
 0x229   :  { %v732_v21 = vsub.f32 %v2295_v60, %v651_v42  ;;  %v733_v45 = vsub.f32 %v2296_v20, %v651_v42  ;;  %1456 = vmatprep.mubr.msk.f32.mxu1 %vm94_vm0, %v803_v43 }
 0x22a   :  { %1140 = vmatmul.mubr.f32.gmra.mrb[62].mxu1 %v802_v55 }
 0x22b   :  { %v804_v44 = vmul.f32 %v732_v21, %v732_v21  ;;  %v805_v48 = vmul.f32 %v733_v45, %v733_v45 }
 0x22c   :  { %v656_v53 = vpop.permute.xlu1 %655 }
 0x22d   :  { %v734_v23 = vsub.f32 %v2297_v61, %v656_v53  ;;  %v735_v22 = vsub.f32 %v2298_v47, %v656_v53  ;;  %1457 = vmatprep.mubr.msk.f32.mxu1 %vm94_vm0, %v805_v48 }
 0x22e   :  { %1145 = vmatmul.mubr.f32.gmra.mrb[64].mxu1 %v804_v44 }
 0x22f   :  { %v806_v46 = vmul.f32 %v734_v23, %v734_v23  ;;  %v807_v1 = vmul.f32 %v735_v22, %v735_v22 }
 0x230   :  { %v661_v9 = vpop.permute.xlu0 %660 }
 0x231   :  { %v736_v25 = vsub.f32 %v2299_v8, %v661_v9  ;;  %v737_v24 = vsub.f32 %v2300_v50, %v661_v9  ;;  %1458 = vmatprep.mubr.msk.f32.mxu1 %vm94_vm0, %v807_v1 }
 0x232   :  { %1150 = vmatmul.mubr.f32.gmra.mrb[66].mxu1 %v806_v46 }
 0x233   :  { %v808_v49 = vmul.f32 %v736_v25, %v736_v25  ;;  %v809_v3 = vmul.f32 %v737_v24, %v737_v24 }
 0x234   :  { %v666_v51 = vpop.permute.xlu1 %665 }
 0x235   :  { %v738_v27 = vsub.f32 %v2301_v2, %v666_v51  ;;  %v739_v11 = vsub.f32 %v2302_v26, %v666_v51  ;;  %1459 = vmatprep.mubr.msk.f32.mxu1 %vm94_vm0, %v809_v3 }
 0x236   :  { %1155 = vmatmul.mubr.f32.gmra.mrb[68].mxu1 %v808_v49 }
 0x237   :  { %v810_v10 = vmul.f32 %v738_v27, %v738_v27  ;;  %v811_v62 = vmul.f32 %v739_v11, %v739_v11 }
 0x239   :  { %1460 = vmatprep.mubr.msk.f32.mxu1 %vm94_vm0, %v811_v62 }
 0x23a   :  { %1160 = vmatmul.mubr.f32.gmra.mrb[70].mxu1 %v810_v10 }
 0x281   :  { %v986_v29 = vpop.f32.mrb[0].mxu1 }
 0x282   :  { %v1165_v28 = vmul.f32 0.004016064, %v986_v29  ;;  %v988_v56 = vpop.f32.mrb[1].mxu1 }
 0x284   :  { %v1201_v63 = vmax.f32 %v1165_v28, 1e-06 }
 0x285   :  { %v991_v13 = vpop.f32.mrb[2].mxu1 }
 0x286   :  { %v1237_v31 = vmin.f32 %v1201_v63, 1000000.0  ;;  %v1166_v30 = vmul.f32 0.004016064, %v991_v13  ;;  %v993_v12 = vpop.f32.mrb[3].mxu1 }
 0x288   :  { %1536 = vlog2.f32 %v1237_v31  ;;  %v1202_v5 = vmax.f32 %v1166_v30, 1e-06 }
 0x289   :  { %v996_v4 = vpop.f32.mrb[4].mxu1 }
 0x28a   :  { %v1238_v33 = vmin.f32 %v1202_v5, 1000000.0  ;;  %v1167_v32 = vmul.f32 0.004016064, %v996_v4  ;;  %v998_v59 = vpop.f32.mrb[5].mxu1 }
 0x28c   :  { %1538 = vlog2.f32 %v1238_v33  ;;  %v1203_v15 = vmax.f32 %v1167_v32, 1e-06 }
 0x28d   :  { %v1001_v14 = vpop.f32.mrb[6].mxu1 }
 0x28e   :  { %v1239_v35 = vmin.f32 %v1203_v15, 1000000.0  ;;  %v1168_v34 = vmul.f32 0.004016064, %v1001_v14  ;;  %v1003_v0 = vpop.f32.mrb[7].mxu1 }
 0x290   :  { %1540 = vlog2.f32 %v1239_v35  ;;  %v1204_v54 = vmax.f32 %v1168_v34, 1e-06 }
 0x291   :  { %v1006_v58 = vpop.f32.mrb[8].mxu1 }
 0x292   :  { %v1537_v37 = vpop.eup %1536  ;;  %v1240_v36 = vmin.f32 %v1204_v54, 1000000.0  ;;  %v1169_v17 = vmul.f32 0.004016064, %v1006_v58  ;;  %v1008_v16 = vpop.f32.mrb[9].mxu1 }
 0x293   :  { %v1274_v57 = vmul.f32 0.6931472, %v1537_v37 }
 0x294   :  { %1542 = vlog2.f32 %v1240_v36  ;;  %v1205_v39 = vmax.f32 %v1169_v17, 1e-06 }
 0x295   :  { %1346 = vst.msk [vmem:[%s2230_s1] sm:$0xff] %vm1345_vm4, %v1274_v57  ;;  %v1011_v38 = vpop.f32.mrb[10].mxu1 }
 0x296   :  { %v1539_v52 = vpop.eup %1538  ;;  %v1241_v7 = vmin.f32 %v1205_v39, 1000000.0  ;;  %v1170_v19 = vmul.f32 0.004016064, %v1011_v38  ;;  %v1013_v41 = vpop.f32.mrb[11].mxu1 }
 0x297   :  { %v1276_v40 = vmul.f32 0.6931472, %v1539_v52 }
 0x298   :  { %1544 = vlog2.f32 %v1241_v7  ;;  %v1206_v18 = vmax.f32 %v1170_v19, 1e-06 }
 0x299   :  { %1347 = vst.msk [vmem:[%s2230_s1 + $0x8] sm:$0xff] %vm1345_vm4, %v1276_v40  ;;  %v1016_v6 = vpop.f32.mrb[12].mxu1 }
 0x29a   :  { %v1541_v55 = vpop.eup %1540  ;;  %v1242_v43 = vmin.f32 %v1206_v18, 1000000.0  ;;  %v1171_v42 = vmul.f32 0.004016064, %v1016_v6  ;;  %v1018_v60 = vpop.f32.mrb[13].mxu1 }
 0x29b   :  { %v1278_v21 = vmul.f32 0.6931472, %v1541_v55 }
 0x29c   :  { %1546 = vlog2.f32 %v1242_v43  ;;  %v1207_v20 = vmax.f32 %v1171_v42, 1e-06 }
 0x29d   :  { %1348 = vst.msk [vmem:[%s2230_s1 + $0x10] sm:$0xff] %vm1345_vm4, %v1278_v21  ;;  %v1021_v45 = vpop.f32.mrb[14].mxu1 }
 0x29e   :  { %v1543_v44 = vpop.eup %1542  ;;  %v1243_v48 = vmin.f32 %v1207_v20, 1000000.0  ;;  %v1172_v53 = vmul.f32 0.004016064, %v1021_v45  ;;  %v1023_v61 = vpop.f32.mrb[15].mxu1 }
 0x29f   :  { %v1280_v23 = vmul.f32 0.6931472, %v1543_v44 }
 0x2a0   :  { %1548 = vlog2.f32 %v1243_v48  ;;  %v1208_v47 = vmax.f32 %v1172_v53, 1e-06 }
 0x2a1   :  { %1349 = vst.msk [vmem:[%s2230_s1 + $0x18] sm:$0xff] %vm1345_vm4, %v1280_v23  ;;  %v1026_v22 = vpop.f32.mrb[16].mxu1 }
 0x2a2   :  { %v1545_v46 = vpop.eup %1544  ;;  %v1244_v1 = vmin.f32 %v1208_v47, 1000000.0  ;;  %v1173_v9 = vmul.f32 0.004016064, %v1026_v22  ;;  %v1028_v8 = vpop.f32.mrb[17].mxu1 }
 0x2a3   :  { %v1282_v25 = vmul.f32 0.6931472, %v1545_v46 }
 0x2a4   :  { %1550 = vlog2.f32 %v1244_v1  ;;  %v1209_v50 = vmax.f32 %v1173_v9, 1e-06 }
 0x2a5   :  { %1350 = vst.msk [vmem:[%s2230_s1 + $0x20] sm:$0xff] %vm1345_vm4, %v1282_v25  ;;  %v1031_v24 = vpop.f32.mrb[18].mxu1 }
 0x2a6   :  { %v1547_v49 = vpop.eup %1546  ;;  %v1245_v3 = vmin.f32 %v1209_v50, 1000000.0  ;;  %v1174_v51 = vmul.f32 0.004016064, %v1031_v24  ;;  %v1033_v2 = vpop.f32.mrb[19].mxu1 }
 0x2a7   :  { %v1284_v27 = vmul.f32 0.6931472, %v1547_v49 }
 0x2a8   :  { %1552 = vlog2.f32 %v1245_v3  ;;  %v1210_v26 = vmax.f32 %v1174_v51, 1e-06 }
 0x2a9   :  { %1351 = vst.msk [vmem:[%s2230_s1 + $0x28] sm:$0xff] %vm1345_vm4, %v1284_v27  ;;  %v1036_v11 = vpop.f32.mrb[20].mxu1 }
 0x2aa   :  { %v1549_v10 = vpop.eup %1548  ;;  %v1246_v62 = vmin.f32 %v1210_v26, 1000000.0  ;;  %v1175_v29 = vmul.f32 0.004016064, %v1036_v11  ;;  %v1038_v28 = vpop.f32.mrb[21].mxu1 }
 0x2ab   :  { %v1286_v56 = vmul.f32 0.6931472, %v1549_v10 }
 0x2ac   :  { %1554 = vlog2.f32 %v1246_v62  ;;  %v1211_v63 = vmax.f32 %v1175_v29, 1e-06 }
 0x2ad   :  { %1352 = vst.msk [vmem:[%s2230_s1 + $0x30] sm:$0xff] %vm1345_vm4, %v1286_v56  ;;  %v1041_v13 = vpop.f32.mrb[22].mxu1 }
 0x2ae   :  { %v1551_v31 = vpop.eup %1550  ;;  %v1247_v30 = vmin.f32 %v1211_v63, 1000000.0  ;;  %v1176_v12 = vmul.f32 0.004016064, %v1041_v13  ;;  %v1043_v5 = vpop.f32.mrb[23].mxu1 }
 0x2af   :  { %v1288_v4 = vmul.f32 0.6931472, %v1551_v31 }
 0x2b0   :  { %1556 = vlog2.f32 %v1247_v30  ;;  %v1212_v33 = vmax.f32 %v1176_v12, 1e-06 }
 0x2b1   :  { %1353 = vst.msk [vmem:[%s2230_s1 + $0x38] sm:$0xff] %vm1345_vm4, %v1288_v4  ;;  %v1046_v32 = vpop.f32.mrb[24].mxu1 }
 0x2b2   :  { %v1553_v59 = vpop.eup %1552  ;;  %v1248_v15 = vmin.f32 %v1212_v33, 1000000.0  ;;  %v1177_v14 = vmul.f32 0.004016064, %v1046_v32  ;;  %v1048_v35 = vpop.f32.mrb[25].mxu1 }
 0x2b3   :  { %v1290_v34 = vmul.f32 0.6931472, %v1553_v59 }
 0x2b4   :  { %1558 = vlog2.f32 %v1248_v15  ;;  %v1213_v0 = vmax.f32 %v1177_v14, 1e-06 }
 0x2b5   :  { %1354 = vst.msk [vmem:[%s2230_s1 + $0x40] sm:$0xff] %vm1345_vm4, %v1290_v34  ;;  %v1051_v54 = vpop.f32.mrb[26].mxu1 }
 0x2b6   :  { %v1555_v58 = vpop.eup %1554  ;;  %v1249_v37 = vmin.f32 %v1213_v0, 1000000.0  ;;  %v1178_v36 = vmul.f32 0.004016064, %v1051_v54  ;;  %v1053_v17 = vpop.f32.mrb[27].mxu1 }
 0x2b7   :  { %v1292_v16 = vmul.f32 0.6931472, %v1555_v58 }
 0x2b8   :  { %1560 = vlog2.f32 %v1249_v37  ;;  %v1214_v57 = vmax.f32 %v1178_v36, 1e-06 }
 0x2b9   :  { %1355 = vst.msk [vmem:[%s2230_s1 + $0x48] sm:$0xff] %vm1345_vm4, %v1292_v16  ;;  %v1056_v39 = vpop.f32.mrb[28].mxu1 }
 0x2ba   :  { %v1557_v38 = vpop.eup %1556  ;;  %v1250_v52 = vmin.f32 %v1214_v57, 1000000.0  ;;  %v1179_v7 = vmul.f32 0.004016064, %v1056_v39  ;;  %v1058_v19 = vpop.f32.mrb[29].mxu1 }
 0x2bb   :  { %v1294_v41 = vmul.f32 0.6931472, %v1557_v38 }
 0x2bc   :  { %1562 = vlog2.f32 %v1250_v52  ;;  %v1215_v40 = vmax.f32 %v1179_v7, 1e-06 }
 0x2bd   :  { %1356 = vst.msk [vmem:[%s2230_s1 + $0x50] sm:$0xff] %vm1345_vm4, %v1294_v41  ;;  %v1061_v18 = vpop.f32.mrb[30].mxu1 }
 0x2be   :  { %v1559_v6 = vpop.eup %1558  ;;  %v1251_v55 = vmin.f32 %v1215_v40, 1000000.0  ;;  %v1180_v43 = vmul.f32 0.004016064, %v1061_v18  ;;  %v1063_v42 = vpop.f32.mrb[31].mxu1 }
 0x2bf   :  { %v1296_v60 = vmul.f32 0.6931472, %v1559_v6 }
 0x2c0   :  { %1564 = vlog2.f32 %v1251_v55  ;;  %v1216_v21 = vmax.f32 %v1180_v43, 1e-06 }
 0x2c1   :  { %1357 = vst.msk [vmem:[%s2230_s1 + $0x58] sm:$0xff] %vm1345_vm4, %v1296_v60  ;;  %v1066_v20 = vpop.f32.mrb[32].mxu1 }
 0x2c2   :  { %v1561_v45 = vpop.eup %1560  ;;  %v1252_v44 = vmin.f32 %v1216_v21, 1000000.0  ;;  %v1181_v48 = vmul.f32 0.004016064, %v1066_v20  ;;  %v1068_v53 = vpop.f32.mrb[33].mxu1 }
 0x2c3   :  { %v1298_v61 = vmul.f32 0.6931472, %v1561_v45 }
 0x2c4   :  { %1566 = vlog2.f32 %v1252_v44  ;;  %v1217_v23 = vmax.f32 %v1181_v48, 1e-06 }
 0x2c5   :  { %1358 = vst.msk [vmem:[%s2230_s1 + $0x60] sm:$0xff] %vm1345_vm4, %v1298_v61  ;;  %v1071_v47 = vpop.f32.mrb[34].mxu1 }
 0x2c6   :  { %v1563_v22 = vpop.eup %1562  ;;  %v1253_v46 = vmin.f32 %v1217_v23, 1000000.0  ;;  %v1182_v1 = vmul.f32 0.004016064, %v1071_v47  ;;  %v1073_v9 = vpop.f32.mrb[35].mxu1 }
 0x2c7   :  { %v1300_v8 = vmul.f32 0.6931472, %v1563_v22 }
 0x2c8   :  { %1568 = vlog2.f32 %v1253_v46  ;;  %v1218_v25 = vmax.f32 %v1182_v1, 1e-06 }
 0x2c9   :  { %1359 = vst.msk [vmem:[%s2230_s1 + $0x68] sm:$0xff] %vm1345_vm4, %v1300_v8  ;;  %v1076_v50 = vpop.f32.mrb[36].mxu1 }
 0x2ca   :  { %v1565_v24 = vpop.eup %1564  ;;  %v1254_v49 = vmin.f32 %v1218_v25, 1000000.0  ;;  %v1183_v3 = vmul.f32 0.004016064, %v1076_v50  ;;  %v1078_v51 = vpop.f32.mrb[37].mxu1 }
 0x2cb   :  { %v1302_v2 = vmul.f32 0.6931472, %v1565_v24 }
 0x2cc   :  { %1570 = vlog2.f32 %v1254_v49  ;;  %v1219_v27 = vmax.f32 %v1183_v3, 1e-06 }
 0x2cd   :  { %1360 = vst.msk [vmem:[%s2230_s1 + $0x70] sm:$0xff] %vm1345_vm4, %v1302_v2  ;;  %v1081_v26 = vpop.f32.mrb[38].mxu1 }
 0x2ce   :  { %v1567_v11 = vpop.eup %1566  ;;  %v1255_v10 = vmin.f32 %v1219_v27, 1000000.0  ;;  %v1184_v62 = vmul.f32 0.004016064, %v1081_v26  ;;  %v1083_v29 = vpop.f32.mrb[39].mxu1 }
 0x2cf   :  { %v1304_v28 = vmul.f32 0.6931472, %v1567_v11 }
 0x2d0   :  { %1572 = vlog2.f32 %v1255_v10  ;;  %v1220_v56 = vmax.f32 %v1184_v62, 1e-06 }
 0x2d1   :  { %1361 = vst.msk [vmem:[%s2230_s1 + $0x78] sm:$0xff] %vm1345_vm4, %v1304_v28  ;;  %v1086_v63 = vpop.f32.mrb[40].mxu1 }
 0x2d2   :  { %v1569_v13 = vpop.eup %1568  ;;  %v1256_v31 = vmin.f32 %v1220_v56, 1000000.0  ;;  %v1185_v30 = vmul.f32 0.004016064, %v1086_v63  ;;  %v1088_v12 = vpop.f32.mrb[41].mxu1 }
 0x2d3   :  { %v1306_v5 = vmul.f32 0.6931472, %v1569_v13 }
 0x2d4   :  { %1574 = vlog2.f32 %v1256_v31  ;;  %v1221_v4 = vmax.f32 %v1185_v30, 1e-06 }
 0x2d5   :  { %1362 = vst.msk [vmem:[%s2230_s1 + $0x80] sm:$0xff] %vm1345_vm4, %v1306_v5  ;;  %v1091_v33 = vpop.f32.mrb[42].mxu1 }
 0x2d6   :  { %v1571_v32 = vpop.eup %1570  ;;  %v1257_v59 = vmin.f32 %v1221_v4, 1000000.0  ;;  %v1186_v15 = vmul.f32 0.004016064, %v1091_v33  ;;  %v1093_v14 = vpop.f32.mrb[43].mxu1 }
 0x2d7   :  { %v1308_v35 = vmul.f32 0.6931472, %v1571_v32 }
 0x2d8   :  { %1576 = vlog2.f32 %v1257_v59  ;;  %v1222_v34 = vmax.f32 %v1186_v15, 1e-06 }
 0x2d9   :  { %1363 = vst.msk [vmem:[%s2230_s1 + $0x88] sm:$0xff] %vm1345_vm4, %v1308_v35  ;;  %v1096_v0 = vpop.f32.mrb[44].mxu1 }
 0x2da   :  { %v1573_v54 = vpop.eup %1572  ;;  %v1258_v58 = vmin.f32 %v1222_v34, 1000000.0  ;;  %v1187_v37 = vmul.f32 0.004016064, %v1096_v0  ;;  %v1098_v36 = vpop.f32.mrb[45].mxu1 }
 0x2db   :  { %v1310_v17 = vmul.f32 0.6931472, %v1573_v54 }
 0x2dc   :  { %1578 = vlog2.f32 %v1258_v58  ;;  %v1223_v16 = vmax.f32 %v1187_v37, 1e-06 }
 0x2dd   :  { %1364 = vst.msk [vmem:[%s2230_s1 + $0x90] sm:$0xff] %vm1345_vm4, %v1310_v17  ;;  %v1101_v57 = vpop.f32.mrb[46].mxu1 }
 0x2de   :  { %v1575_v39 = vpop.eup %1574  ;;  %v1259_v38 = vmin.f32 %v1223_v16, 1000000.0  ;;  %v1188_v52 = vmul.f32 0.004016064, %v1101_v57  ;;  %v1103_v7 = vpop.f32.mrb[47].mxu1 }
 0x2df   :  { %v1312_v19 = vmul.f32 0.6931472, %v1575_v39 }
 0x2e0   :  { %1580 = vlog2.f32 %v1259_v38  ;;  %v1224_v41 = vmax.f32 %v1188_v52, 1e-06 }
 0x2e1   :  { %1365 = vst.msk [vmem:[%s2230_s1 + $0x98] sm:$0xff] %vm1345_vm4, %v1312_v19  ;;  %v1106_v40 = vpop.f32.mrb[48].mxu1 }
 0x2e2   :  { %v1577_v18 = vpop.eup %1576  ;;  %v1260_v6 = vmin.f32 %v1224_v41, 1000000.0  ;;  %v1189_v55 = vmul.f32 0.004016064, %v1106_v40  ;;  %v1108_v43 = vpop.f32.mrb[49].mxu1 }
 0x2e3   :  { %v1314_v42 = vmul.f32 0.6931472, %v1577_v18 }
 0x2e4   :  { %1582 = vlog2.f32 %v1260_v6  ;;  %v1225_v60 = vmax.f32 %v1189_v55, 1e-06 }
 0x2e5   :  { %1366 = vst.msk [vmem:[%s2230_s1 + $0xa0] sm:$0xff] %vm1345_vm4, %v1314_v42  ;;  %v1111_v21 = vpop.f32.mrb[50].mxu1 }
 0x2e6   :  { %v1579_v20 = vpop.eup %1578  ;;  %v1261_v45 = vmin.f32 %v1225_v60, 1000000.0  ;;  %v1190_v44 = vmul.f32 0.004016064, %v1111_v21  ;;  %v1113_v48 = vpop.f32.mrb[51].mxu1 }
 0x2e7   :  { %v1316_v53 = vmul.f32 0.6931472, %v1579_v20 }
 0x2e8   :  { %1584 = vlog2.f32 %v1261_v45  ;;  %v1226_v61 = vmax.f32 %v1190_v44, 1e-06 }
 0x2e9   :  { %1367 = vst.msk [vmem:[%s2230_s1 + $0xa8] sm:$0xff] %vm1345_vm4, %v1316_v53  ;;  %v1116_v23 = vpop.f32.mrb[52].mxu1 }
 0x2ea   :  { %v1581_v47 = vpop.eup %1580  ;;  %v1262_v22 = vmin.f32 %v1226_v61, 1000000.0  ;;  %v1191_v46 = vmul.f32 0.004016064, %v1116_v23  ;;  %v1118_v1 = vpop.f32.mrb[53].mxu1 }
 0x2eb   :  { %v1318_v9 = vmul.f32 0.6931472, %v1581_v47 }
 0x2ec   :  { %1586 = vlog2.f32 %v1262_v22  ;;  %v1227_v8 = vmax.f32 %v1191_v46, 1e-06 }
 0x2ed   :  { %1368 = vst.msk [vmem:[%s2230_s1 + $0xb0] sm:$0xff] %vm1345_vm4, %v1318_v9  ;;  %v1121_v25 = vpop.f32.mrb[54].mxu1 }
 0x2ee   :  { %v1583_v50 = vpop.eup %1582  ;;  %v1263_v24 = vmin.f32 %v1227_v8, 1000000.0  ;;  %v1192_v49 = vmul.f32 0.004016064, %v1121_v25  ;;  %v1123_v3 = vpop.f32.mrb[55].mxu1 }
 0x2ef   :  { %v1320_v51 = vmul.f32 0.6931472, %v1583_v50 }
 0x2f0   :  { %1588 = vlog2.f32 %v1263_v24  ;;  %v1228_v2 = vmax.f32 %v1192_v49, 1e-06 }
 0x2f1   :  { %1369 = vst.msk [vmem:[%s2230_s1 + $0xb8] sm:$0xff] %vm1345_vm4, %v1320_v51  ;;  %v1126_v27 = vpop.f32.mrb[56].mxu1 }
 0x2f2   :  { %v1585_v26 = vpop.eup %1584  ;;  %v1264_v11 = vmin.f32 %v1228_v2, 1000000.0  ;;  %v1193_v10 = vmul.f32 0.004016064, %v1126_v27  ;;  %v1128_v62 = vpop.f32.mrb[57].mxu1 }
 0x2f3   :  { %v1322_v29 = vmul.f32 0.6931472, %v1585_v26 }
 0x2f4   :  { %1590 = vlog2.f32 %v1264_v11  ;;  %v1229_v28 = vmax.f32 %v1193_v10, 1e-06 }
 0x2f5   :  { %1370 = vst.msk [vmem:[%s2230_s1 + $0xc0] sm:$0xff] %vm1345_vm4, %v1322_v29  ;;  %v1131_v56 = vpop.f32.mrb[58].mxu1 }
 0x2f6   :  { %v1587_v63 = vpop.eup %1586  ;;  %v1265_v13 = vmin.f32 %v1229_v28, 1000000.0  ;;  %v1194_v31 = vmul.f32 0.004016064, %v1131_v56  ;;  %v1133_v30 = vpop.f32.mrb[59].mxu1 }
 0x2f7   :  { %v1324_v12 = vmul.f32 0.6931472, %v1587_v63 }
 0x2f8   :  { %1592 = vlog2.f32 %v1265_v13  ;;  %v1230_v5 = vmax.f32 %v1194_v31, 1e-06 }
 0x2f9   :  { %1371 = vst.msk [vmem:[%s2230_s1 + $0xc8] sm:$0xff] %vm1345_vm4, %v1324_v12  ;;  %v1136_v4 = vpop.f32.mrb[60].mxu1 }
 0x2fa   :  { %v1589_v33 = vpop.eup %1588  ;;  %v1266_v32 = vmin.f32 %v1230_v5, 1000000.0  ;;  %v1195_v59 = vmul.f32 0.004016064, %v1136_v4  ;;  %v1138_v15 = vpop.f32.mrb[61].mxu1 }
 0x2fb   :  { %v1326_v14 = vmul.f32 0.6931472, %v1589_v33 }
 0x2fc   :  { %1594 = vlog2.f32 %v1266_v32  ;;  %v1231_v35 = vmax.f32 %v1195_v59, 1e-06 }
 0x2fd   :  { %1372 = vst.msk [vmem:[%s2230_s1 + $0xd0] sm:$0xff] %vm1345_vm4, %v1326_v14  ;;  %v1141_v34 = vpop.f32.mrb[62].mxu1 }
 0x2fe   :  { %v1591_v0 = vpop.eup %1590  ;;  %v1267_v54 = vmin.f32 %v1231_v35, 1000000.0  ;;  %v1196_v58 = vmul.f32 0.004016064, %v1141_v34  ;;  %v1143_v37 = vpop.f32.mrb[63].mxu1 }
 0x2ff   :  { %v1328_v36 = vmul.f32 0.6931472, %v1591_v0 }
 0x300   :  { %1596 = vlog2.f32 %v1267_v54  ;;  %v1232_v17 = vmax.f32 %v1196_v58, 1e-06 }
 0x301   :  { %1373 = vst.msk [vmem:[%s2230_s1 + $0xd8] sm:$0xff] %vm1345_vm4, %v1328_v36  ;;  %v1146_v16 = vpop.f32.mrb[64].mxu1 }
 0x302   :  { %v1593_v57 = vpop.eup %1592  ;;  %v1268_v39 = vmin.f32 %v1232_v17, 1000000.0  ;;  %v1197_v38 = vmul.f32 0.004016064, %v1146_v16  ;;  %v1148_v52 = vpop.f32.mrb[65].mxu1 }
 0x303   :  { %v1330_v7 = vmul.f32 0.6931472, %v1593_v57 }
 0x304   :  { %1598 = vlog2.f32 %v1268_v39  ;;  %v1233_v19 = vmax.f32 %v1197_v38, 1e-06 }
 0x305   :  { %1374 = vst.msk [vmem:[%s2230_s1 + $0xe0] sm:$0xff] %vm1345_vm4, %v1330_v7  ;;  %v1151_v41 = vpop.f32.mrb[66].mxu1 }
 0x306   :  { %v1595_v40 = vpop.eup %1594  ;;  %v1269_v18 = vmin.f32 %v1233_v19, 1000000.0  ;;  %v1198_v6 = vmul.f32 0.004016064, %v1151_v41  ;;  %v1153_v55 = vpop.f32.mrb[67].mxu1 }
 0x307   :  { %v1332_v43 = vmul.f32 0.6931472, %v1595_v40 }
 0x308   :  { %1600 = vlog2.f32 %v1269_v18  ;;  %v1234_v42 = vmax.f32 %v1198_v6, 1e-06 }
 0x309   :  { %1375 = vst.msk [vmem:[%s2230_s1 + $0xe8] sm:$0xff] %vm1345_vm4, %v1332_v43  ;;  %v1156_v60 = vpop.f32.mrb[68].mxu1 }
 0x30a   :  { %v1597_v21 = vpop.eup %1596  ;;  %v1270_v20 = vmin.f32 %v1234_v42, 1000000.0  ;;  %v1199_v45 = vmul.f32 0.004016064, %v1156_v60  ;;  %v1158_v44 = vpop.f32.mrb[69].mxu1 }
 0x30b   :  { %v1334_v48 = vmul.f32 0.6931472, %v1597_v21 }
 0x30c   :  { %1602 = vlog2.f32 %v1270_v20  ;;  %v1235_v53 = vmax.f32 %v1199_v45, 1e-06 }
 0x30d   :  { %1376 = vst.msk [vmem:[%s2230_s1 + $0xf0] sm:$0xff] %vm1345_vm4, %v1334_v48  ;;  %v1161_v61 = vpop.f32.mrb[70].mxu1 }
 0x30e   :  { %v1599_v23 = vpop.eup %1598  ;;  %v1271_v47 = vmin.f32 %v1235_v53, 1000000.0  ;;  %v1200_v22 = vmul.f32 0.004016064, %v1161_v61  ;;  %v1163_v46 = vpop.f32.mrb[71].mxu1 }
 0x30f   :  { %v1336_v1 = vmul.f32 0.6931472, %v1599_v23 }
 0x310   :  { %1604 = vlog2.f32 %v1271_v47  ;;  %v1236_v9 = vmax.f32 %v1200_v22, 1e-06 }
 0x311   :  { %1377 = vst.msk [vmem:[%s2230_s1 + $0xf8] sm:$0xff] %vm1345_vm4, %v1336_v1 }
 0x312   :  { %v1601_v8 = vpop.eup %1600  ;;  %v1272_v25 = vmin.f32 %v1236_v9, 1000000.0 }
 0x313   :  { %v1338_v50 = vmul.f32 0.6931472, %v1601_v8 }
 0x314   :  { %1606 = vlog2.f32 %v1272_v25 }
 0x315   :  { %1378 = vst.msk [vmem:[%s2230_s1 + $0x100] sm:$0xff] %vm1345_vm4, %v1338_v50 }
 0x316   :  { %v1603_v24 = vpop.eup %1602 }
 0x317   :  { %v1340_v49 = vmul.f32 0.6931472, %v1603_v24 }
 0x319   :  { %1379 = vst.msk [vmem:[%s2230_s1 + $0x108] sm:$0xff] %vm1345_vm4, %v1340_v49 }
 0x31a   :  { %v1605_v3 = vpop.eup %1604 }
 0x31b   :  { %v1342_v51 = vmul.f32 0.6931472, %v1605_v3 }
 0x31d   :  { %1380 = vst.msk [vmem:[%s2230_s1 + $0x110] sm:$0xff] %vm1345_vm4, %v1342_v51 }
 0x31e   :  { %v1607_v2 = vpop.eup %1606 }
 0x31f   :  { %v1344_v27 = vmul.f32 0.6931472, %v1607_v2 }
 0x321   :  { %1381 = vst.msk [vmem:[%s2230_s1 + $0x118] sm:$0xff] %vm1345_vm4, %v1344_v27 }
 0x322   :  { %1386 = vsyncpa [#allocation3], 1 }

</bundles_post_ra>
